<compile_context>
chip_gen: v7x
topology: tpu7x:2x2x1
jax: 0.10.0
libtpu: 0.0.40
codegen_flags: <defaults>
</compile_context>

<pallas_src>
import functools

import jax
import jax.numpy as jnp
from jax.experimental import pallas as pl
from jax.experimental.pallas import tpu as pltpu


def _round_up(x, m):
    return (x + m - 1) // m * m


def _largest_tile(n, candidates):
    """Largest candidate that evenly divides n (n is always a multiple of 128)."""
    for c in candidates:
        if n % c == 0:
            return c
    return n


def _vmem_limit_bytes():
    # Generation-aware scoped-VMEM budget: ~3/4 of physical VMEM, capped at
    # 96 MiB (v5e/v6e: 128 MiB physical; v7x: 64 MiB -> ~48 MiB).  Our per-step
    # footprints are far smaller; this just keeps the pipeliner un-capped.
    try:
        cap = pltpu.get_tpu_info().vmem_capacity_bytes
        return int(min(cap * 3 // 4, 96 * 1024 * 1024))
    except Exception:
        return 32 * 1024 * 1024


# ---------------------------------------------------------------------------
# Kernel A: fused QKV projection + flash attention + gamma-residual +
#           LeakyReLU(0.05) + InstanceNorm partial statistics.
#   grid = (B, Np//T, Np//T); channels-first tiles (C, T).
# ---------------------------------------------------------------------------
def _fused_attn_kernel(xq_ref, xk_ref, wq_ref, wkv_ref, bq_ref, bkv_ref,
                       gamma_ref, y_ref, ssum_ref, ssq_ref,
                       q_sc, m_sc, l_sc, acc_sc,
                       *, c8p, n_valid, tq, tk, padded):
    qi = pl.program_id(1)
    ki = pl.program_id(2)

    @pl.when(ki == 0)
    def _():
        # q projection for this query tile, once per (b, qi).
        xq = xq_ref[0].astype(jnp.bfloat16)                               # (C, Tq)
        q = jnp.dot(wq_ref[...], xq, preferred_element_type=jnp.float32)  # (C8p, Tq)
        q_sc[...] = q + bq_ref[...]
        m_sc[...] = jnp.full_like(m_sc, -jnp.inf)
        l_sc[...] = jnp.zeros_like(l_sc)
        acc_sc[...] = jnp.zeros_like(acc_sc)

    # k/v projection for this key tile.
    xk = xk_ref[0].astype(jnp.bfloat16)                                   # (C, Tk)
    kv = jnp.dot(wkv_ref[...], xk, preferred_element_type=jnp.float32)    # (C8p+C, Tk)
    kv = kv + bkv_ref[...]
    k = kv[:c8p, :]                                                       # (C8p, Tk) f32
    v = kv[c8p:, :]                                                       # (C, Tk)   f32

    # s[j, i] = <k_j, q_i>: keys on the sublane axis, queries lane-dense, so the
    # softmax reduces over sublanes and the accumulator/output stay lane-dense.
    s = jax.lax.dot_general(k, q_sc[...],
                            dimension_numbers=(((0,), (0,)), ((), ())),
                            preferred_element_type=jnp.float32)           # (Tk, Tq)
    if padded:  # mask padded key columns (static: only emitted when Np != N)
        k_idx = ki * tk + jax.lax.broadcasted_iota(jnp.int32, (tk, 1), 0)
        s = jnp.where(k_idx < n_valid, s, -jnp.inf)

    # Online softmax (f32 math on VPU/EUP).
    m_prev = m_sc[...]                                                    # (1, Tq)
    m_new = jnp.maximum(m_prev, jnp.max(s, axis=0, keepdims=True))
    alpha = jnp.exp(m_prev - m_new)
    p = jnp.exp(s - m_new)                                                # (Tk, Tq)
    l_sc[...] = alpha * l_sc[...] + jnp.sum(p, axis=0, keepdims=True)
    acc_sc[...] = alpha * acc_sc[...] + jnp.dot(
        v.astype(jnp.bfloat16), p.astype(jnp.bfloat16),
        preferred_element_type=jnp.float32)                               # (C, Tq)
    m_sc[...] = m_new

    @pl.when(ki == pl.num_programs(2) - 1)
    def _():
        inv_l = pl.reciprocal(l_sc[...], approx=True)                     # (1, Tq)
        y = gamma_ref[0] * (acc_sc[...] * inv_l) + xq_ref[0]              # residual
        y = jnp.where(y >= 0, y, 0.05 * y)                                # LeakyReLU(0.05)
        # InstanceNorm partial statistics (padded query columns masked out).
        if padded:
            q_idx = qi * tq + jax.lax.broadcasted_iota(jnp.int32, (1, tq), 1)
            y_stat = jnp.where(q_idx < n_valid, y, 0.0)
        else:
            y_stat = y
        ssum_ref[0, 0] = jnp.sum(y_stat, axis=1, keepdims=True)           # (C, 1)
        ssq_ref[0, 0] = jnp.sum(y_stat * y_stat, axis=1, keepdims=True)   # (C, 1)
        y_ref[0] = y.astype(y_ref.dtype)


# ---------------------------------------------------------------------------
# Kernel B: normalize-only InstanceNorm pass: out = y * scale[b,c] + shift[b,c]
#   (scale/shift precomputed from the fused kernel's partial statistics).
# ---------------------------------------------------------------------------
def _norm_scale_kernel(y_ref, scale_ref, shift_ref, o_ref):
    y = y_ref[0].astype(jnp.float32)                                      # (C, Tn)
    o_ref[0] = (y * scale_ref[0] + shift_ref[0]).astype(o_ref.dtype)


@jax.jit
def self_attn_block(x, wq, bq, wk, bk, wv, bv, gamma, in_w, in_b):
    """x: (B, C, W, H) float32 NCHW; conv weights in (C_out, C_in) layout."""
    B, C, W, H = x.shape
    N = W * H
    C8 = wq.shape[0]
    C8p = max(_round_up(C8, 8), 8)       # sublane-aligned q/k channel width

    Np = _round_up(N, 128)
    T = _largest_tile(Np, (512, 256, 128))
    n_q = Np // T
    n_k = Np // T
    padded = (Np != N)

    # NCHW -> (B, C, N) channels-first; n = w*H + h matches torch .view flatten.
    x_flat = x.reshape(B, C, N).astype(jnp.float32)
    if padded:
        x_flat = jnp.pad(x_flat, ((0, 0), (0, 0), (0, Np - N)))

    pad8 = C8p - C8  # zero rows: padded q/k channels are exactly 0 -> no effect
    wq_p = jnp.pad(wq, ((0, pad8), (0, 0))).astype(jnp.bfloat16)          # (C8p, C)
    bq_p = jnp.pad(bq, (0, pad8)).reshape(C8p, 1).astype(jnp.float32)
    wkv = jnp.concatenate([jnp.pad(wk, ((0, pad8), (0, 0))), wv],
                          axis=0).astype(jnp.bfloat16)                    # (C8p+C, C)
    bkv = jnp.concatenate([jnp.pad(bk, (0, pad8)), bv]
                          ).reshape(C8p + C, 1).astype(jnp.float32)
    gamma_s = gamma.reshape(1).astype(jnp.float32)

    vmem_limit = _vmem_limit_bytes()

    kernel = functools.partial(_fused_attn_kernel, c8p=C8p, n_valid=N,
                               tq=T, tk=T, padded=padded)

    y, ssum, ssq = pl.pallas_call(
        kernel,
        out_shape=(jax.ShapeDtypeStruct((B, C, Np), jnp.bfloat16),        # y (pre-norm)
                   jax.ShapeDtypeStruct((B, n_q, C, 1), jnp.float32),     # partial sum
                   jax.ShapeDtypeStruct((B, n_q, C, 1), jnp.float32)),    # partial sumsq
        grid_spec=pltpu.PrefetchScalarGridSpec(
            num_scalar_prefetch=0,
            grid=(B, n_q, n_k),
            in_specs=[
                pl.BlockSpec((1, C, T), lambda b, qi, ki: (b, 0, qi)),    # x query/residual
                pl.BlockSpec((1, C, T), lambda b, qi, ki: (b, 0, ki)),    # x key/value
                pl.BlockSpec((C8p, C), lambda b, qi, ki: (0, 0)),         # Wq (resident)
                pl.BlockSpec((C8p + C, C), lambda b, qi, ki: (0, 0)),     # [Wk;Wv] (resident)
                pl.BlockSpec((C8p, 1), lambda b, qi, ki: (0, 0)),         # bq
                pl.BlockSpec((C8p + C, 1), lambda b, qi, ki: (0, 0)),     # [bk;bv]
                pl.BlockSpec(memory_space=pltpu.MemorySpace.SMEM),        # gamma
            ],
            out_specs=(
                pl.BlockSpec((1, C, T), lambda b, qi, ki: (b, 0, qi)),
                pl.BlockSpec((1, 1, C, 1), lambda b, qi, ki: (b, qi, 0, 0)),
                pl.BlockSpec((1, 1, C, 1), lambda b, qi, ki: (b, qi, 0, 0)),
            ),
            scratch_shapes=[
                pltpu.VMEM((C8p, T), jnp.float32),   # q tile (projected once per (b,qi))
                pltpu.VMEM((1, T), jnp.float32),     # running max
                pltpu.VMEM((1, T), jnp.float32),     # running denominator
                pltpu.VMEM((C, T), jnp.float32),     # output accumulator
            ]),
        compiler_params=pltpu.CompilerParams(
            # B and the query-tile axis are independent -> sharded across the
            # two TensorCores on v7x; the key axis carries the online softmax.
            dimension_semantics=("parallel", "parallel", "arbitrary"),
            vmem_limit_bytes=vmem_limit),
    )(x_flat, x_flat, wq_p, wkv, bq_p, bkv, gamma_s)

    # InstanceNorm2d(affine=True), training-mode per-instance stats, eps=1e-5.
    # Tiny (B, n_q, C) reduction of the per-tile partials, then fold mean/var
    # and the affine params into a single scale/shift per (b, c).
    s1 = jnp.sum(ssum[..., 0], axis=1)                                    # (B, C)
    s2 = jnp.sum(ssq[..., 0], axis=1)                                     # (B, C)
    mean = s1 / N
    var = jnp.maximum(s2 / N - mean * mean, 0.0)
    inv = jax.lax.rsqrt(var + 1e-5)
    scale = (inv * in_w[None, :]).reshape(B, C, 1).astype(jnp.float32)
    shift = (in_b[None, :] - mean * inv * in_w[None, :]
             ).reshape(B, C, 1).astype(jnp.float32)

    T3 = _largest_tile(Np, (1024, 512, 256, 128))
    out_full = pl.pallas_call(
        _norm_scale_kernel,
        out_shape=jax.ShapeDtypeStruct((B, C, Np), x.dtype),
        grid_spec=pltpu.PrefetchScalarGridSpec(
            num_scalar_prefetch=0,
            grid=(B, Np // T3),
            in_specs=[
                pl.BlockSpec((1, C, T3), lambda b, i: (b, 0, i)),
                pl.BlockSpec((1, C, 1), lambda b, i: (b, 0, 0)),
                pl.BlockSpec((1, C, 1), lambda b, i: (b, 0, 0)),
            ],
            out_specs=pl.BlockSpec((1, C, T3), lambda b, i: (b, 0, i))),
        compiler_params=pltpu.CompilerParams(
            dimension_semantics=("parallel", "parallel"),
            vmem_limit_bytes=vmem_limit),
    )(y, scale, shift)

    if padded:
        out_full = out_full[:, :, :N]
    return out_full.reshape(B, C, W, H)


def _reference(x, wq, bq, wk, bk, wv, bv, gamma, in_w, in_b):
    """Pure-JAX port of the PyTorch SelfAttnBlock forward, for validation."""
    B, C, W, H = x.shape
    N = W * H
    xf = x.reshape(B, C, N)
    q = jnp.einsum("oc,bcn->bon", wq, xf) + bq[None, :, None]             # (B, C8, N)
    k = jnp.einsum("oc,bcn->bon", wk, xf) + bk[None, :, None]             # (B, C8, N)
    v = jnp.einsum("oc,bcn->bon", wv, xf) + bv[None, :, None]             # (B, C, N)
    energy = jnp.einsum("bci,bcj->bij", q, k)                             # (B, N, N)
    attention = jax.nn.softmax(energy, axis=-1)
    out = jnp.einsum("bcj,bij->bci", v, attention)                        # (B, C, N)
    out = out.reshape(B, C, W, H)
    out = gamma[0] * out + x
    out = jnp.where(out >= 0, out, 0.05 * out)                            # LeakyReLU(0.05)
    mean = out.mean(axis=(2, 3), keepdims=True)
    var = ((out - mean) ** 2).mean(axis=(2, 3), keepdims=True)
    out = (out - mean) * jax.lax.rsqrt(var + 1e-5)
    return out * in_w[None, :, None, None] + in_b[None, :, None, None]


if __name__ == "__main__":
    key = jax.random.PRNGKey(0)
    B, C, W, H = 2, 16, 16, 16
    C8 = C // 8

    keys = jax.random.split(key, 9)
    x = jax.random.normal(keys[0], (B, C, W, H), dtype=jnp.float32)

    # Conv2d(in_dim, in_dim//8, 1) etc.; weights in (C_out, C_in) layout.
    wq = 0.1 * jax.random.normal(keys[1], (C8, C), dtype=jnp.float32)
    bq = 0.1 * jax.random.normal(keys[2], (C8,), dtype=jnp.float32)
    wk = 0.1 * jax.random.normal(keys[3], (C8, C), dtype=jnp.float32)
    bk = 0.1 * jax.random.normal(keys[4], (C8,), dtype=jnp.float32)
    wv = 0.1 * jax.random.normal(keys[5], (C, C), dtype=jnp.float32)
    bv = 0.1 * jax.random.normal(keys[6], (C,), dtype=jnp.float32)
    # Module inits gamma = 0 (attention path no-op); nonzero exercises the math.
    gamma = jnp.array([0.5], dtype=jnp.float32)
    # InstanceNorm affine params (module inits weight=1, bias=0; perturbed here).
    in_w = 1.0 + 0.1 * jax.random.normal(keys[7], (C,), dtype=jnp.float32)
    in_b = 0.1 * jax.random.normal(keys[8], (C,), dtype=jnp.float32)

    out = self_attn_block(x, wq, bq, wk, bk, wv, bv, gamma, in_w, in_b)
    out = jax.block_until_ready(out)

    ref = _reference(x, wq, bq, wk, bk, wv, bv, gamma, in_w, in_b)
    assert out.shape == (B, C, W, H)
    max_err = jnp.max(jnp.abs(out - ref))
    # bf16 MXU inputs / bf16 intermediate y (f32 accumulation & stats) ->
    # relaxed tolerance vs the f32 reference.
    assert jnp.allclose(out, ref, atol=2e-2, rtol=2e-2), (
        f"max abs err = {max_err}")

    print("KERNEL_OK")
</pallas_src>

<mosaic_0001>
module attributes {stable_mosaic.version = 11 : i64} {
  func.func @_fused_attn_kernel(%arg0: i32, %arg1: i32, %arg2: i32, %arg3: memref<1x16x256xf32, #tpu.memory_space<vmem>>, %arg4: memref<1x16x256xf32, #tpu.memory_space<vmem>>, %arg5: memref<8x16xbf16, #tpu.memory_space<vmem>>, %arg6: memref<24x16xbf16, #tpu.memory_space<vmem>>, %arg7: memref<8x1xf32, #tpu.memory_space<vmem>>, %arg8: memref<24x1xf32, #tpu.memory_space<vmem>>, %arg9: memref<1xf32, #tpu.memory_space<smem>>, %arg10: memref<1x16x256xbf16, #tpu.memory_space<vmem>>, %arg11: memref<1x1x16x1xf32, #tpu.memory_space<vmem>>, %arg12: memref<1x1x16x1xf32, #tpu.memory_space<vmem>>, %arg13: memref<8x256xf32, #tpu.memory_space<vmem>>, %arg14: memref<1x256xf32, #tpu.memory_space<vmem>>, %arg15: memref<1x256xf32, #tpu.memory_space<vmem>>, %arg16: memref<16x256xf32, #tpu.memory_space<vmem>>) attributes {dimension_semantics = [#tpu.dimension_semantics<parallel>, #tpu.dimension_semantics<parallel>, #tpu.dimension_semantics<arbitrary>], iteration_bounds = array<i64: 2, 1, 1>, scalar_prefetch = 0 : i64, scratch_operands = 4 : i64, tpu.core_type = #tpu.core_type<tc>, window_params = [{transform_indices = @transform_0, window_bounds = array<i64: 1, 16, 256>}, {transform_indices = @transform_1, window_bounds = array<i64: 1, 16, 256>}, {pipeline_mode = #tpu.pipeline_mode<synchronous>, transform_indices = @transform_2, window_bounds = array<i64: 8, 16>}, {pipeline_mode = #tpu.pipeline_mode<synchronous>, transform_indices = @transform_3, window_bounds = array<i64: 24, 16>}, {pipeline_mode = #tpu.pipeline_mode<synchronous>, transform_indices = @transform_4, window_bounds = array<i64: 8, 1>}, {pipeline_mode = #tpu.pipeline_mode<synchronous>, transform_indices = @transform_5, window_bounds = array<i64: 24, 1>}, {transform_indices = @transform_6, window_bounds = array<i64: 1>}, {transform_indices = @transform_7, window_bounds = array<i64: 1, 16, 256>}, {transform_indices = @transform_8, window_bounds = array<i64: 1, 1, 16, 1>}, {transform_indices = @transform_9, window_bounds = array<i64: 1, 1, 16, 1>}]} {
    %c0_i32 = arith.constant 0 : i32
    %0 = arith.cmpi eq, %arg2, %c0_i32 : i32
    %1 = arith.extui %0 : i1 to i32
    %c0_i32_0 = arith.constant 0 : i32
    %2 = arith.cmpi ne, %1, %c0_i32_0 : i32
    scf.if %2 {
      %c0_27 = arith.constant 0 : index
      %c0_28 = arith.constant 0 : index
      %c0_29 = arith.constant 0 : index
      %42 = vector.load %arg3[%c0_27, %c0_28, %c0_29] : memref<1x16x256xf32, #tpu.memory_space<vmem>>, vector<1x16x256xf32>
      %43 = vector.shape_cast %42 : vector<1x16x256xf32> to vector<16x256xf32>
      %44 = arith.truncf %43 : vector<16x256xf32> to vector<16x256xbf16>
      %c0_30 = arith.constant 0 : index
      %c0_31 = arith.constant 0 : index
      %45 = vector.load %arg5[%c0_30, %c0_31] : memref<8x16xbf16, #tpu.memory_space<vmem>>, vector<8x16xbf16>
      %cst_32 = arith.constant dense<0.000000e+00> : vector<8x256xf32>
      %46 = tpu.matmul %45, %44, %cst_32 {dimension_numbers = #tpu.dot_dimension_numbers<[1], [0], [0], [1], [0, 0, 1, 1], [], []>} : vector<8x16xbf16>, vector<16x256xbf16>, vector<8x256xf32> -> vector<8x256xf32>
      %c0_33 = arith.constant 0 : index
      %c0_34 = arith.constant 0 : index
      %47 = vector.load %arg7[%c0_33, %c0_34] : memref<8x1xf32, #tpu.memory_space<vmem>>, vector<8x1xf32>
      %48 = vector.broadcast %47 : vector<8x1xf32> to vector<8x256xf32>
      %49 = arith.addf %46, %48 : vector<8x256xf32>
      %c0_35 = arith.constant 0 : index
      %c0_36 = arith.constant 0 : index
      %50 = vector.load %arg13[%c0_35, %c0_36] : memref<8x256xf32, #tpu.memory_space<vmem>>, vector<8x256xf32>
      tpu.vector_store %arg13[%c0_35, %c0_36], %49 {strides = array<i32>} : memref<8x256xf32, #tpu.memory_space<vmem>>, vector<8x256xf32>,
      %cst_37 = arith.constant 0xFF800000 : f32
      %51 = vector.broadcast %cst_37 : f32 to vector<1x256xf32>
      %c0_38 = arith.constant 0 : index
      %c0_39 = arith.constant 0 : index
      %52 = vector.load %arg14[%c0_38, %c0_39] : memref<1x256xf32, #tpu.memory_space<vmem>>, vector<1x256xf32>
      tpu.vector_store %arg14[%c0_38, %c0_39], %51 {strides = array<i32>} : memref<1x256xf32, #tpu.memory_space<vmem>>, vector<1x256xf32>,
      %cst_40 = arith.constant 0.000000e+00 : f32
      %53 = vector.broadcast %cst_40 : f32 to vector<1x256xf32>
      %c0_41 = arith.constant 0 : index
      %c0_42 = arith.constant 0 : index
      %54 = vector.load %arg15[%c0_41, %c0_42] : memref<1x256xf32, #tpu.memory_space<vmem>>, vector<1x256xf32>
      tpu.vector_store %arg15[%c0_41, %c0_42], %53 {strides = array<i32>} : memref<1x256xf32, #tpu.memory_space<vmem>>, vector<1x256xf32>,
      %cst_43 = arith.constant 0.000000e+00 : f32
      %55 = vector.broadcast %cst_43 : f32 to vector<16x256xf32>
      %c0_44 = arith.constant 0 : index
      %c0_45 = arith.constant 0 : index
      %56 = vector.load %arg16[%c0_44, %c0_45] : memref<16x256xf32, #tpu.memory_space<vmem>>, vector<16x256xf32>
      tpu.vector_store %arg16[%c0_44, %c0_45], %55 {strides = array<i32>} : memref<16x256xf32, #tpu.memory_space<vmem>>, vector<16x256xf32>,
    } else {
    }
    %c0 = arith.constant 0 : index
    %c0_1 = arith.constant 0 : index
    %c0_2 = arith.constant 0 : index
    %3 = vector.load %arg4[%c0, %c0_1, %c0_2] : memref<1x16x256xf32, #tpu.memory_space<vmem>>, vector<1x16x256xf32>
    %4 = vector.shape_cast %3 : vector<1x16x256xf32> to vector<16x256xf32>
    %5 = arith.truncf %4 : vector<16x256xf32> to vector<16x256xbf16>
    %c0_3 = arith.constant 0 : index
    %c0_4 = arith.constant 0 : index
    %6 = vector.load %arg6[%c0_3, %c0_4] : memref<24x16xbf16, #tpu.memory_space<vmem>>, vector<24x16xbf16>
    %cst = arith.constant dense<0.000000e+00> : vector<24x256xf32>
    %7 = tpu.matmul %6, %5, %cst {dimension_numbers = #tpu.dot_dimension_numbers<[1], [0], [0], [1], [0, 0, 1, 1], [], []>} : vector<24x16xbf16>, vector<16x256xbf16>, vector<24x256xf32> -> vector<24x256xf32>
    %c0_5 = arith.constant 0 : index
    %c0_6 = arith.constant 0 : index
    %8 = vector.load %arg8[%c0_5, %c0_6] : memref<24x1xf32, #tpu.memory_space<vmem>>, vector<24x1xf32>
    %9 = vector.broadcast %8 : vector<24x1xf32> to vector<24x256xf32>
    %10 = arith.addf %7, %9 : vector<24x256xf32>
    %11 = vector.extract_strided_slice %10 {offsets = [0, 0], sizes = [8, 256], strides = [1, 1]} : vector<24x256xf32> to vector<8x256xf32>
    %12 = vector.extract_strided_slice %10 {offsets = [8, 0], sizes = [16, 256], strides = [1, 1]} : vector<24x256xf32> to vector<16x256xf32>
    %c0_7 = arith.constant 0 : index
    %c0_8 = arith.constant 0 : index
    %13 = vector.load %arg13[%c0_7, %c0_8] : memref<8x256xf32, #tpu.memory_space<vmem>>, vector<8x256xf32>
    %cst_9 = arith.constant dense<0.000000e+00> : vector<256x256xf32>
    %14 = tpu.matmul %11, %13, %cst_9 {dimension_numbers = #tpu.dot_dimension_numbers<[0], [0], [1], [1], [0, 1, 1, 1], [], []>} : vector<8x256xf32>, vector<8x256xf32>, vector<256x256xf32> -> vector<256x256xf32>
    %c0_10 = arith.constant 0 : index
    %c0_11 = arith.constant 0 : index
    %15 = vector.load %arg14[%c0_10, %c0_11] : memref<1x256xf32, #tpu.memory_space<vmem>>, vector<1x256xf32>
    %cst_12 = arith.constant dense<0xFF800000> : vector<256xf32>
    %16 = vector.multi_reduction <maximumf>, %14, %cst_12 [0] : vector<256x256xf32> to vector<256xf32>
    %17 = vector.shape_cast %16 : vector<256xf32> to vector<1x256xf32>
    %18 = arith.maximumf %15, %17 : vector<1x256xf32>
    %19 = arith.subf %15, %18 : vector<1x256xf32>
    %20 = math.exp %19 : vector<1x256xf32>
    %21 = vector.broadcast %18 : vector<1x256xf32> to vector<256x256xf32>
    %22 = arith.subf %14, %21 : vector<256x256xf32>
    %23 = math.exp %22 : vector<256x256xf32>
    %c0_13 = arith.constant 0 : index
    %c0_14 = arith.constant 0 : index
    %24 = vector.load %arg15[%c0_13, %c0_14] : memref<1x256xf32, #tpu.memory_space<vmem>>, vector<1x256xf32>
    %25 = arith.mulf %20, %24 : vector<1x256xf32>
    %cst_15 = arith.constant dense<0.000000e+00> : vector<256xf32>
    %26 = vector.multi_reduction <add>, %23, %cst_15 [0] : vector<256x256xf32> to vector<256xf32>
    %27 = vector.shape_cast %26 : vector<256xf32> to vector<1x256xf32>
    %28 = arith.addf %25, %27 : vector<1x256xf32>
    %c0_16 = arith.constant 0 : index
    %c0_17 = arith.constant 0 : index
    %29 = vector.load %arg15[%c0_16, %c0_17] : memref<1x256xf32, #tpu.memory_space<vmem>>, vector<1x256xf32>
    tpu.vector_store %arg15[%c0_16, %c0_17], %28 {strides = array<i32>} : memref<1x256xf32, #tpu.memory_space<vmem>>, vector<1x256xf32>,
    %c0_18 = arith.constant 0 : index
    %c0_19 = arith.constant 0 : index
    %30 = vector.load %arg16[%c0_18, %c0_19] : memref<16x256xf32, #tpu.memory_space<vmem>>, vector<16x256xf32>
    %31 = vector.broadcast %20 : vector<1x256xf32> to vector<16x256xf32>
    %32 = arith.mulf %31, %30 : vector<16x256xf32>
    %33 = arith.truncf %12 : vector<16x256xf32> to vector<16x256xbf16>
    %34 = arith.truncf %23 : vector<256x256xf32> to vector<256x256xbf16>
    %cst_20 = arith.constant dense<0.000000e+00> : vector<16x256xf32>
    %35 = tpu.matmul %33, %34, %cst_20 {dimension_numbers = #tpu.dot_dimension_numbers<[1], [0], [0], [1], [0, 0, 1, 1], [], []>} : vector<16x256xbf16>, vector<256x256xbf16>, vector<16x256xf32> -> vector<16x256xf32>
    %36 = arith.addf %32, %35 : vector<16x256xf32>
    %c0_21 = arith.constant 0 : index
    %c0_22 = arith.constant 0 : index
    %37 = vector.load %arg16[%c0_21, %c0_22] : memref<16x256xf32, #tpu.memory_space<vmem>>, vector<16x256xf32>
    tpu.vector_store %arg16[%c0_21, %c0_22], %36 {strides = array<i32>} : memref<16x256xf32, #tpu.memory_space<vmem>>, vector<16x256xf32>,
    %c0_23 = arith.constant 0 : index
    %c0_24 = arith.constant 0 : index
    %38 = vector.load %arg14[%c0_23, %c0_24] : memref<1x256xf32, #tpu.memory_space<vmem>>, vector<1x256xf32>
    tpu.vector_store %arg14[%c0_23, %c0_24], %18 {strides = array<i32>} : memref<1x256xf32, #tpu.memory_space<vmem>>, vector<1x256xf32>,
    %c0_i32_25 = arith.constant 0 : i32
    %39 = arith.cmpi eq, %arg2, %c0_i32_25 : i32
    %40 = arith.extui %39 : i1 to i32
    %c0_i32_26 = arith.constant 0 : i32
    %41 = arith.cmpi ne, %40, %c0_i32_26 : i32
    scf.if %41 {
      %c0_27 = arith.constant 0 : index
      %c0_28 = arith.constant 0 : index
      %42 = vector.load %arg15[%c0_27, %c0_28] : memref<1x256xf32, #tpu.memory_space<vmem>>, vector<1x256xf32>
      %43 = tpu.reciprocal %42 {approx = true} : vector<1x256xf32> -> vector<1x256xf32>
      %c0_29 = arith.constant 0 : index
      %44 = memref.load %arg9[%c0_29] : memref<1xf32, #tpu.memory_space<smem>>
      %c0_30 = arith.constant 0 : index
      %c0_31 = arith.constant 0 : index
      %45 = vector.load %arg16[%c0_30, %c0_31] : memref<16x256xf32, #tpu.memory_space<vmem>>, vector<16x256xf32>
      %46 = vector.broadcast %43 : vector<1x256xf32> to vector<16x256xf32>
      %47 = arith.mulf %45, %46 : vector<16x256xf32>
      %48 = vector.broadcast %44 : f32 to vector<16x256xf32>
      %49 = arith.mulf %48, %47 : vector<16x256xf32>
      %c0_32 = arith.constant 0 : index
      %c0_33 = arith.constant 0 : index
      %c0_34 = arith.constant 0 : index
      %50 = vector.load %arg3[%c0_32, %c0_33, %c0_34] : memref<1x16x256xf32, #tpu.memory_space<vmem>>, vector<1x16x256xf32>
      %51 = vector.shape_cast %50 : vector<1x16x256xf32> to vector<16x256xf32>
      %52 = arith.addf %49, %51 : vector<16x256xf32>
      %cst_35 = arith.constant 0.000000e+00 : f32
      %53 = vector.broadcast %cst_35 : f32 to vector<16x256xf32>
      %54 = arith.cmpf oge, %52, %53 : vector<16x256xf32>
      %cst_36 = arith.constant 5.000000e-02 : f32
      %55 = vector.broadcast %cst_36 : f32 to vector<16x256xf32>
      %56 = arith.mulf %55, %52 : vector<16x256xf32>
      %57 = arith.select %54, %52, %56 : vector<16x256xi1>, vector<16x256xf32>
      %cst_37 = arith.constant dense<0.000000e+00> : vector<16xf32>
      %58 = vector.multi_reduction <add>, %57, %cst_37 [1] : vector<16x256xf32> to vector<16xf32>
      %59 = vector.shape_cast %58 : vector<16xf32> to vector<16x1xf32>
      %c0_38 = arith.constant 0 : index
      %c0_39 = arith.constant 0 : index
      %c0_40 = arith.constant 0 : index
      %c0_41 = arith.constant 0 : index
      %60 = vector.load %arg11[%c0_38, %c0_39, %c0_40, %c0_41] : memref<1x1x16x1xf32, #tpu.memory_space<vmem>>, vector<1x1x16x1xf32>
      %61 = vector.shape_cast %60 : vector<1x1x16x1xf32> to vector<16x1xf32>
      %62 = vector.shape_cast %59 : vector<16x1xf32> to vector<1x1x16x1xf32>
      tpu.vector_store %arg11[%c0_38, %c0_39, %c0_40, %c0_41], %62 {strides = array<i32>} : memref<1x1x16x1xf32, #tpu.memory_space<vmem>>, vector<1x1x16x1xf32>,
      %63 = arith.mulf %57, %57 : vector<16x256xf32>
      %cst_42 = arith.constant dense<0.000000e+00> : vector<16xf32>
      %64 = vector.multi_reduction <add>, %63, %cst_42 [1] : vector<16x256xf32> to vector<16xf32>
      %65 = vector.shape_cast %64 : vector<16xf32> to vector<16x1xf32>
      %c0_43 = arith.constant 0 : index
      %c0_44 = arith.constant 0 : index
      %c0_45 = arith.constant 0 : index
      %c0_46 = arith.constant 0 : index
      %66 = vector.load %arg12[%c0_43, %c0_44, %c0_45, %c0_46] : memref<1x1x16x1xf32, #tpu.memory_space<vmem>>, vector<1x1x16x1xf32>
      %67 = vector.shape_cast %66 : vector<1x1x16x1xf32> to vector<16x1xf32>
      %68 = vector.shape_cast %65 : vector<16x1xf32> to vector<1x1x16x1xf32>
      tpu.vector_store %arg12[%c0_43, %c0_44, %c0_45, %c0_46], %68 {strides = array<i32>} : memref<1x1x16x1xf32, #tpu.memory_space<vmem>>, vector<1x1x16x1xf32>,
      %69 = arith.truncf %57 : vector<16x256xf32> to vector<16x256xbf16>
      %c0_47 = arith.constant 0 : index
      %c0_48 = arith.constant 0 : index
      %c0_49 = arith.constant 0 : index
      %70 = vector.load %arg10[%c0_47, %c0_48, %c0_49] : memref<1x16x256xbf16, #tpu.memory_space<vmem>>, vector<1x16x256xbf16>
      %71 = vector.shape_cast %70 : vector<1x16x256xbf16> to vector<16x256xbf16>
      %72 = vector.shape_cast %69 : vector<16x256xbf16> to vector<1x16x256xbf16>
      tpu.vector_store %arg10[%c0_47, %c0_48, %c0_49], %72 {strides = array<i32>} : memref<1x16x256xbf16, #tpu.memory_space<vmem>>, vector<1x16x256xbf16>,
    } else {
    }
    return
  }
  func.func @transform_0(%arg0: i32, %arg1: i32, %arg2: i32) -> (i32, i32, i32) {
    %c0_i32 = arith.constant 0 : i32
    %c0_i32_0 = arith.constant 0 : i32
    return %arg0, %c0_i32, %arg1 : i32, i32, i32
  }
  func.func @transform_1(%arg0: i32, %arg1: i32, %arg2: i32) -> (i32, i32, i32) {
    %c0_i32 = arith.constant 0 : i32
    %c0_i32_0 = arith.constant 0 : i32
    return %arg0, %c0_i32, %arg2 : i32, i32, i32
  }
  func.func @transform_2(%arg0: i32, %arg1: i32, %arg2: i32) -> (i32, i32) {
    %c0_i32 = arith.constant 0 : i32
    %c0_i32_0 = arith.constant 0 : i32
    %c0_i32_1 = arith.constant 0 : i32
    return %c0_i32, %c0_i32_0 : i32, i32
  }
  func.func @transform_3(%arg0: i32, %arg1: i32, %arg2: i32) -> (i32, i32) {
    %c0_i32 = arith.constant 0 : i32
    %c0_i32_0 = arith.constant 0 : i32
    %c0_i32_1 = arith.constant 0 : i32
    return %c0_i32, %c0_i32_0 : i32, i32
  }
  func.func @transform_4(%arg0: i32, %arg1: i32, %arg2: i32) -> (i32, i32) {
    %c0_i32 = arith.constant 0 : i32
    %c0_i32_0 = arith.constant 0 : i32
    %c0_i32_1 = arith.constant 0 : i32
    return %c0_i32, %c0_i32_0 : i32, i32
  }
  func.func @transform_5(%arg0: i32, %arg1: i32, %arg2: i32) -> (i32, i32) {
    %c0_i32 = arith.constant 0 : i32
    %c0_i32_0 = arith.constant 0 : i32
    %c0_i32_1 = arith.constant 0 : i32
    return %c0_i32, %c0_i32_0 : i32, i32
  }
  func.func @transform_6(%arg0: i32, %arg1: i32, %arg2: i32) -> i32 {
    %c0_i32 = arith.constant 0 : i32
    %c0_i32_0 = arith.constant 0 : i32
    return %c0_i32 : i32
  }
  func.func @transform_7(%arg0: i32, %arg1: i32, %arg2: i32) -> (i32, i32, i32) {
    %c0_i32 = arith.constant 0 : i32
    %c0_i32_0 = arith.constant 0 : i32
    return %arg0, %c0_i32, %arg1 : i32, i32, i32
  }
  func.func @transform_8(%arg0: i32, %arg1: i32, %arg2: i32) -> (i32, i32, i32, i32) {
    %c0_i32 = arith.constant 0 : i32
    %c0_i32_0 = arith.constant 0 : i32
    %c0_i32_1 = arith.constant 0 : i32
    return %arg0, %arg1, %c0_i32, %c0_i32_0 : i32, i32, i32, i32
  }
  func.func @transform_9(%arg0: i32, %arg1: i32, %arg2: i32) -> (i32, i32, i32, i32) {
    %c0_i32 = arith.constant 0 : i32
    %c0_i32_0 = arith.constant 0 : i32
    %c0_i32_1 = arith.constant 0 : i32
    return %arg0, %arg1, %c0_i32, %c0_i32_0 : i32, i32, i32, i32
  }
}

module attributes {stable_mosaic.version = 11 : i64} {
  func.func @_norm_scale_kernel(%arg0: i32, %arg1: i32, %arg2: memref<1x16x256xbf16, #tpu.memory_space<vmem>>, %arg3: memref<1x16x1xf32, #tpu.memory_space<vmem>>, %arg4: memref<1x16x1xf32, #tpu.memory_space<vmem>>, %arg5: memref<1x16x256xf32, #tpu.memory_space<vmem>>) attributes {dimension_semantics = [#tpu.dimension_semantics<parallel>, #tpu.dimension_semantics<parallel>], iteration_bounds = array<i64: 2, 1>, scalar_prefetch = 0 : i64, scratch_operands = 0 : i64, tpu.core_type = #tpu.core_type<tc>, window_params = [{transform_indices = @transform_0, window_bounds = array<i64: 1, 16, 256>}, {transform_indices = @transform_1, window_bounds = array<i64: 1, 16, 1>}, {transform_indices = @transform_2, window_bounds = array<i64: 1, 16, 1>}, {transform_indices = @transform_3, window_bounds = array<i64: 1, 16, 256>}]} {
    %c0 = arith.constant 0 : index
    %c0_0 = arith.constant 0 : index
    %c0_1 = arith.constant 0 : index
    %0 = vector.load %arg2[%c0, %c0_0, %c0_1] : memref<1x16x256xbf16, #tpu.memory_space<vmem>>, vector<1x16x256xbf16>
    %1 = vector.shape_cast %0 : vector<1x16x256xbf16> to vector<16x256xbf16>
    %2 = arith.extf %1 : vector<16x256xbf16> to vector<16x256xf32>
    %c0_2 = arith.constant 0 : index
    %c0_3 = arith.constant 0 : index
    %c0_4 = arith.constant 0 : index
    %3 = vector.load %arg3[%c0_2, %c0_3, %c0_4] : memref<1x16x1xf32, #tpu.memory_space<vmem>>, vector<1x16x1xf32>
    %4 = vector.shape_cast %3 : vector<1x16x1xf32> to vector<16x1xf32>
    %5 = vector.broadcast %4 : vector<16x1xf32> to vector<16x256xf32>
    %6 = arith.mulf %2, %5 : vector<16x256xf32>
    %c0_5 = arith.constant 0 : index
    %c0_6 = arith.constant 0 : index
    %c0_7 = arith.constant 0 : index
    %7 = vector.load %arg4[%c0_5, %c0_6, %c0_7] : memref<1x16x1xf32, #tpu.memory_space<vmem>>, vector<1x16x1xf32>
    %8 = vector.shape_cast %7 : vector<1x16x1xf32> to vector<16x1xf32>
    %9 = vector.broadcast %8 : vector<16x1xf32> to vector<16x256xf32>
    %10 = arith.addf %6, %9 : vector<16x256xf32>
    %c0_8 = arith.constant 0 : index
    %c0_9 = arith.constant 0 : index
    %c0_10 = arith.constant 0 : index
    %11 = vector.load %arg5[%c0_8, %c0_9, %c0_10] : memref<1x16x256xf32, #tpu.memory_space<vmem>>, vector<1x16x256xf32>
    %12 = vector.shape_cast %11 : vector<1x16x256xf32> to vector<16x256xf32>
    %13 = vector.shape_cast %10 : vector<16x256xf32> to vector<1x16x256xf32>
    tpu.vector_store %arg5[%c0_8, %c0_9, %c0_10], %13 {strides = array<i32>} : memref<1x16x256xf32, #tpu.memory_space<vmem>>, vector<1x16x256xf32>,
    return
  }
  func.func @transform_0(%arg0: i32, %arg1: i32) -> (i32, i32, i32) {
    %c0_i32 = arith.constant 0 : i32
    %c0_i32_0 = arith.constant 0 : i32
    return %arg0, %c0_i32, %arg1 : i32, i32, i32
  }
  func.func @transform_1(%arg0: i32, %arg1: i32) -> (i32, i32, i32) {
    %c0_i32 = arith.constant 0 : i32
    %c0_i32_0 = arith.constant 0 : i32
    %c0_i32_1 = arith.constant 0 : i32
    return %arg0, %c0_i32, %c0_i32_0 : i32, i32, i32
  }
  func.func @transform_2(%arg0: i32, %arg1: i32) -> (i32, i32, i32) {
    %c0_i32 = arith.constant 0 : i32
    %c0_i32_0 = arith.constant 0 : i32
    %c0_i32_1 = arith.constant 0 : i32
    return %arg0, %c0_i32, %c0_i32_0 : i32, i32, i32
  }
  func.func @transform_3(%arg0: i32, %arg1: i32) -> (i32, i32, i32) {
    %c0_i32 = arith.constant 0 : i32
    %c0_i32_0 = arith.constant 0 : i32
    return %arg0, %c0_i32, %arg1 : i32, i32, i32
  }
}

</mosaic_0001>

<bundles_post_ra>
// kernel: self_attn_block.3
= control target key start
LH: loop header
LB: loop body
LE: loop exit
PB: predicated region body
PF: predicated region fallthrough
CT: control target
= control target key end

     0   :  { %s494_s12 = smov 0   ;;  %s496_s13 = smov 0   ;;  %s533_s0 = inlined_call_operand.vmem [shape: bf16[2,16,256], index: 0, kind: input, shape index: {}]   ;;  %s534_s1 = inlined_call_operand.vmem [shape: f32[2,16,1], index: 1, kind: input, shape index: {}]   ;;  %s535_s2 = inlined_call_operand.vmem [shape: f32[2,16,1], index: 2, kind: input, shape index: {}]   ;;  %s536_s3 = inlined_call_operand.vmem [shape: f32[2,16,256], index: 3, kind: output, shape index: {}]  }
   0x1   :  { %s498_s14 = smov 0  }
   0x2 LB: > { %s25_s15 = sadd.s32 1, %s467_s13  ;;  %p407_p0 = scmp.ge.s32.totalorder %s471_s14, 1  ;;  %s471_s14 = sphi %s498_s14, %s13_s14   ;;  %s467_s13 = sphi %s496_s13, %s538_s13   ;;  %s463_s12 = sphi %s494_s12, %s537_s12  }
   0x3   : > { %p27_p1 = scmp.ge.s32.totalorder %s25_s15, 2  ;;  %p178_p2 = scmp.lt.s32.totalorder %s471_s14, 3 }
   0x5   : > { %s540_s15 = smov (%p27_p1, %s25_s15), 0  ;;  %p179_p3 = pnand %p407_p0, %p178_p2 }
   0x6   : > { %p221_p4 = scmp.lt.s32.totalorder (!%p179_p3), %s463_s12, 1  ;;  %v473_v0 = vmov (!%p179_p3), 0  }
   0x7   : > { %182 = sbr.rel (%p179_p3) target bundleno = 156 (0x9c), region = 32  ;;  %448 = vset.pattern.permute.xlu1 (!%p179_p3), %v473_v0  ;;  %447 = vset.pattern.permute.xlu0 (!%p179_p3), %v473_v0 }
   0xe   : > { %s542_s12 = smov (!%p221_p4, %s463_s12), 1 }
   0xf   : > { %s418_s16 = sshll.u32 %s542_s12, 4  ;;  %s421_s26 = sshll.u32 %s542_s12, 5 }
  0x10   : > { %s239_s19 = scalar_lea.vmem %s535_s2, %s418_s16  ;;  %s234_s22 = scalar_lea.vmem %s534_s1, %s418_s16 }
  0x11   : > { %v272_v1 = vld [vmem:[%s239_s19] sm:$0xff]  ;;  %v273_v3 = vld [vmem:[%s239_s19 + $0x8] sm:$0xff]  ;;  %s228_s25 = scalar_lea.vmem %s533_s0, %s418_s16  ;;  %s248_s29 = scalar_lea.vmem %s536_s3, %s421_s26 }
  0x12   : > { %276 = vperm.xlu1 %448, %v272_v1   ;;  %v256_v2 = vld [vmem:[%s234_s22] sm:$0xff]  ;;  %v257_v4 = vld [vmem:[%s234_s22 + $0x8] sm:$0xff] }
  0x13   : > { %260 = vperm.xlu0 %447, %v256_v2   ;;  %v250_v5 = vld [vmem:[%s228_s25] sm:$0xff]  ;;  %v251_v8 = vld [vmem:[%s228_s25 + $0x8] sm:$0xff] }
  0x14   : > { %v252_v6 = vunpack.c.l.bf16 %v250_v5  ;;  %v253_v7 = vunpack.c.h.bf16 %v250_v5  ;;  %v254_v13 = vunpack.c.l.bf16 %v251_v8  ;;  %v255_v14 = vunpack.c.h.bf16 %v251_v8 }
  0x16   : > { %281 = vperm.xlu1 %448, %v273_v3  }
  0x17   : > { %265 = vperm.xlu0 %447, %v257_v4  }
  0x91   : > { %v277_v9 = vpop.permute.xlu1 %276 }
  0x92   : > { %v261_v10 = vpop.permute.xlu0 %260 }
  0x93   : > { %v268_v11 = vmul.f32 %v261_v10, %v252_v6  ;;  %v269_v12 = vmul.f32 %v261_v10, %v253_v7 }
  0x95   : > { %v284_v15 = vadd.f32 %v277_v9, %v268_v11  ;;  %v285_v16 = vadd.f32 %v277_v9, %v269_v12  ;;  %v282_v20 = vpop.permute.xlu1 %281 }
  0x96   : > { %v266_v17 = vpop.permute.xlu0 %265 }
  0x97   : > { %288 = vst [vmem:[%s248_s29] sm:$0xff] %v284_v15  ;;  %289 = vst [vmem:[%s248_s29 + $0x8] sm:$0xff] %v285_v16  ;;  %v270_v18 = vmul.f32 %v266_v17, %v254_v13  ;;  %v271_v19 = vmul.f32 %v266_v17, %v255_v14 }
  0x99   : > { %v286_v21 = vadd.f32 %v282_v20, %v270_v18  ;;  %v287_v22 = vadd.f32 %v282_v20, %v271_v19 }
  0x9b   : > { %290 = vst [vmem:[%s248_s29 + $0x10] sm:$0xff] %v286_v21  ;;  %291 = vst [vmem:[%s248_s29 + $0x18] sm:$0xff] %v287_v22 }
  0x9c PF: > { %s13_s14 = sadd.s32 1, %s471_s14   ;;  %s537_s12 = smov %s467_s13 }
  0x9d   : > { %p10_p5 = scmp.ge.s32.totalorder %s13_s14, 4   ;;  %s538_s13 = smov %s540_s15 }
  0x9f   :  { %12 = sbr.rel (!%p10_p5) target bundleno = 2 (0x2), region = 68 }

// kernel: self_attn_block.2
= control target key start
LH: loop header
LB: loop body
LE: loop exit
PB: predicated region body
PF: predicated region fallthrough
CT: control target
= control target key end

     0   :  { %s2160_s11 = smov 0   ;;  %s2162_s12 = smov 0   ;;  %s2911_s0 = inlined_call_operand.vmem [shape: f32[2,16,256], index: 0, kind: input, shape index: {}, may-alias: {0,1}]   ;;  %s2912_s1 = inlined_call_operand.vmem [shape: f32[2,16,256], index: 1, kind: input, shape index: {}, may-alias: {0,1}]   ;;  %s2913_s2 = inlined_call_operand.vmem [shape: bf16[8,16], index: 2, kind: input, shape index: {}]   ;;  %s2914_s3 = inlined_call_operand.vmem [shape: bf16[24,16], index: 3, kind: input, shape index: {}]   ;;  %s2915_s4 = inlined_call_operand.vmem [shape: f32[8,1], index: 4, kind: input, shape index: {}]   ;;  %s2916_s5 = inlined_call_operand.vmem [shape: f32[24,1], index: 5, kind: input, shape index: {}]   ;;  %s2917_s6 = inlined_call_operand.<no memory space> [shape: f32[1], index: 6, kind: input, shape index: {}]   ;;  %s2918_s7 = inlined_call_operand.vmem [shape: bf16[2,16,256], index: 7, kind: output, shape index: {0}]   ;;  %s2919_s8 = inlined_call_operand.vmem [shape: f32[2,1,16,1], index: 8, kind: output, shape index: {1}]   ;;  %s2920_s9 = inlined_call_operand.vmem [shape: f32[2,1,16,1], index: 9, kind: output, shape index: {2}]  }
   0x1   :  { %15 = sst [smem:[#allocation6]] %s2917_s6  ;;  %s2164_s13 = smov 0  }
   0x2 LB: > { %s40_s6 = sadd.s32 1, %s2097_s12  ;;  %p1857_p0 = scmp.ge.s32.totalorder %s2101_s13, 1  ;;  %s2101_s13 = sphi %s2164_s13, %s21_s13   ;;  %s2097_s12 = sphi %s2162_s12, %s3131_s12   ;;  %s2093_s11 = sphi %s2160_s11, %s3130_s11  }
   0x3   : > { %p42_p1 = scmp.ge.s32.totalorder %s40_s6, 2  ;;  %p342_p2 = scmp.lt.s32.totalorder %s2101_s13, 3 }
   0x5   : > { %s3133_s6 = smov (%p42_p1, %s40_s6), 0  ;;  %p343_p3 = pnand %p1857_p0, %p342_p2 }
   0x7   : > { %346 = sbr.rel (%p343_p3) target bundleno = 1206 (0x4b6), region = 48 }
   0xe   : > { %p414_p4 = scmp.lt.s32.totalorder %s2093_s11, 1  ;;  %v2103_v0 = vmov 0   ;;  %v545_v1 = vld [vmem:[%s2916_s5] sm:$0xff]  ;;  %v546_v14 = vld [vmem:[%s2916_s5 + $0x8] sm:$0xff]  ;;  %vm479_vm0 = vcmask 130048   ;;  %v547_v17 = vld [vmem:[%s2916_s5 + $0x10] sm:$0xff] }
   0xf   : > { %515 = vmatprep.mubr.bf16.mxu1 %v2103_v0  ;;  %1944 = vset.pattern.permute.xlu0 %v2103_v0  ;;  %v473_v2 = vld [vmem:[%s2915_s4] sm:$0xff]  ;;  %v1946_v19 = vld [vmem:[%s2914_s3 + $0x8] ss:$0 sps:$4 sm:$0xff]   ;;  %v2104_v20 = vmov 0.0   ;;  %vm695_vm1 = vcmask 64512   ;;  %s1559_s17 = sld [smem:[#allocation6]] }
  0x10   : > { %s3135_s11 = smov (!%p414_p4, %s2093_s11), 1  ;;  %550 = vperm.xlu0 %1944, %v545_v1   ;;  %v472_v15 = vld [vmem:[%s2913_s2] sm:$0xf]  ;;  %856 = vmatprep.mubr.f32.mxu0 %v2104_v20  ;;  %vm1610_vm7 = vcmask 7168  }
  0x11   : > { %s1909_s16 = sshll.u32 %s3135_s11, 5  ;;  %v1945_v18 = vld [vmem:[%s2914_s3] sm:$0xff]   ;;  %s2888_s18 = sshll.u32 %s3135_s11, 4 }
  0x12   : > { %s2190_s21 = scalar_lea.vmem %s2911_s0, %s1909_s16  ;;  %s431_s24 = scalar_lea.vmem %s2912_s1, %s1909_s16 }
  0x13   : > { %v467_v3 = vld [vmem:[%s2190_s21 + $0x8] sm:$0xff]  ;;  %v469_v4 = vld [vmem:[%s2190_s21 + $0x18] sm:$0xff]  ;;  %v466_v5 = vld [vmem:[%s2190_s21] sm:$0xff]  ;;  %s451_s23 = scalar_lea.vmem %s2919_s8, %s2888_s18  ;;  %s460_s26 = scalar_lea.vmem %s2920_s9, %s2888_s18 }
  0x14   : > { %v471_v6 = vpack.c.bf16 %v469_v4, %v467_v3  ;;  %v468_v7 = vld [vmem:[%s2190_s21 + $0x10] sm:$0xff]  ;;  %v537_v8 = vld [vmem:[%s431_s24 + $0x8] sm:$0xff]  ;;  %v539_v9 = vld [vmem:[%s431_s24 + $0x18] sm:$0xff]  ;;  %476 = vperm.xlu0 %1944, %v473_v2  }
  0x15   : > { %v470_v10 = vpack.c.bf16 %v468_v7, %v466_v5  ;;  %v541_v11 = vpack.c.bf16 %v539_v9, %v537_v8  ;;  %v536_v12 = vld [vmem:[%s431_s24] sm:$0xff]  ;;  %v538_v13 = vld [vmem:[%s431_s24 + $0x10] sm:$0xff] }
  0x16   : > { %483 = vmatprep.subr.bf16.mxu1 %v471_v6  ;;  %v540_v16 = vpack.c.bf16 %v538_v13, %v536_v12 }
  0x17   : > { %484 = vmatpush1.bf16.msra.mxu1 %v470_v10 }
  0x18   : > { %578 = vmatprep.subr.bf16.mxu1 %v541_v11  ;;  %555 = vperm.xlu0 %1944, %v546_v14  }
  0x1a   : > { %1868 = vmatmul.mubr.msk.bf16.vlgmr.msra.gmra.mrb[0].mxu1 %vm479_vm0, %v472_v15 }
  0x1b   : > { %579 = vmatpush1.bf16.msra.mxu1 %v540_v16  ;;  %610 = vmatprep.mubr.bf16.mxu1 %v2103_v0 }
  0x1c   : > { %560 = vperm.xlu0 %1944, %v547_v17  }
  0x22   : > { %1871 = vmatmul.mubr.msk.bf16.vlgmr.msra.gmra.mrb[4].mxu1 %vm479_vm0, %v1945_v18 }
  0x23   : > { %620 = vmatprep.mubr.bf16.mxu1 %v2103_v0 }
  0x2a   : > { %1872 = vmatmul.mubr.msk.bf16.gmra.mrb[8].mxu1 %vm479_vm0, %v1946_v19 }
  0x8f   : > { %v551_v21 = vpop.permute.xlu0 %550 }
  0x93   : > { %v477_v22 = vpop.permute.xlu0 %476 }
  0x97   : > { %v556_v32 = vpop.permute.xlu0 %555 }
  0x9b   : > { %v561_v35 = vpop.permute.xlu0 %560 }
  0xed   : > { %v517_v23 = vpop.f32.mrb[0].mxu1 }
  0xee   : > { %v519_v24 = vpop.f32.mrb[1].mxu1  ;;  %v518_v28 = vadd.f32 %v517_v23, %v477_v22  ;;  %v2921_v23 = vlaneseq }
  0xef   : > { %v521_v25 = vpop.f32.mrb[2].mxu1  ;;  %v520_v26 = vadd.f32 %v519_v24, %v477_v22 }
  0xf0   : > { %v522_v27 = vpop.f32.mrb[3].mxu1  ;;  %vm2301_vm2 = vcmp.lt.s32.totalorder %v2921_v23, 256  ;;  %v2985_v25 = vmov 0 }
  0xf1   : > { %792 = vmatprep.subr.mxu0 %v520_v26  ;;  %v2986_v25 = vsel %vm2301_vm2, 4294967295, %v2985_v25  ;;  %v2105_v27 = vmov -inf   ;;  %531 = vst.msk [vmem:[#allocation4] sm:$0x3] %vm2301_vm2, %v2104_v20 }
  0xf2   : > { %793 = vmatpush1.msra.mxu0 %v518_v28  ;;  %2987 = vst [vmem:[#allocation9_spill] sm:$0xff] %v2986_v25  ;;  %530 = vst.msk [vmem:[#allocation3] sm:$0x3] %vm2301_vm2, %v2105_v27 }
  0xf5   : > { %v612_v29 = vpop.f32.mrb[4].mxu1 }
  0xf6   : > { %v614_v30 = vpop.f32.mrb[5].mxu1  ;;  %v613_v31 = vadd.f32 %v612_v29, %v551_v21 }
  0xf7   : > { %v616_v33 = vpop.f32.mrb[6].mxu1  ;;  %v615_v46 = vadd.f32 %v614_v30, %v551_v21 }
  0xf8   : > { %v618_v34 = vpop.f32.mrb[7].mxu1  ;;  %631 = vxpose.xlu1.b32.start.end [1/1] (short) %v613_v31, 128  ;;  %v2215_v37 = vadd.f32 %v616_v33, %v556_v32 }
  0xf9   : > { %v619_v40 = vadd.f32 %v618_v34, %v556_v32 }
  0xfa   : > { %2983 = vst [vmem:[#allocation7_spill] sm:$0xff] %v2215_v37 }
  0xfd   : > { %v622_v36 = vpop.f32.mrb[8].mxu1 }
  0xfe   : > { %v2217_v38 = vadd.f32 %v622_v36, %v561_v35  ;;  %v624_v39 = vpop.f32.mrb[9].mxu1 }
  0xff   : > { %v625_v41 = vadd.f32 %v624_v39, %v561_v35  ;;  %v626_v42 = vpop.f32.mrb[10].mxu1 }
 0x100   : > { %2984 = vst [vmem:[#allocation8_spill] sm:$0xff] %v2217_v38  ;;  %v627_v44 = vpop.f32.mrb[11].mxu1 }
 0x101   : > { %v1469_v45 = vpack.c.bf16 %v625_v41, %v619_v40 }
 0x103   : > { %1534 = vmatprep.mubr.bf16.mxu1 %v1469_v45 }
 0x135   : > { %663 = vxpose.xlu1.b32.start.end [1/1] (short) %v615_v46, 128 }
 0x178   : > { %v647_v47 = vpop.trf.xlu1 }
 0x179   : > { %1873 = vmatmul.mubr.msk.f32.vlgmr.msra.gmra.mrb[0].mxu0 %vm695_vm1, %v647_v47 }
 0x17a   : > { %862 = vmatprep.mubr.f32.mxu0 %v2104_v20 }
 0x17c   : > { %v648_v48 = vpop.trf.xlu1 }
 0x17d   : > { %1874 = vmatmul.mubr.msk.f32.gmra.mrb[2].mxu0 %vm695_vm1, %v648_v48 }
 0x17e   : > { %868 = vmatprep.mubr.f32.mxu0 %v2104_v20 }
 0x180   : > { %v649_v49 = vpop.trf.xlu1 }
 0x181   : > { %1875 = vmatmul.mubr.msk.f32.gmra.mrb[4].mxu0 %vm695_vm1, %v649_v49 }
 0x182   : > { %874 = vmatprep.mubr.f32.mxu0 %v2104_v20 }
 0x184   : > { %v650_v50 = vpop.trf.xlu1 }
 0x185   : > { %1876 = vmatmul.mubr.msk.f32.gmra.mrb[6].mxu0 %vm695_vm1, %v650_v50 }
 0x186   : > { %880 = vmatprep.mubr.f32.mxu0 %v2104_v20 }
 0x188   : > { %v651_v51 = vpop.trf.xlu1 }
 0x189   : > { %1877 = vmatmul.mubr.msk.f32.gmra.mrb[8].mxu0 %vm695_vm1, %v651_v51 }
 0x18a   : > { %886 = vmatprep.mubr.f32.mxu0 %v2104_v20 }
 0x18c   : > { %v652_v52 = vpop.trf.xlu1 }
 0x18d   : > { %1878 = vmatmul.mubr.msk.f32.gmra.mrb[10].mxu0 %vm695_vm1, %v652_v52 }
 0x18e   : > { %892 = vmatprep.mubr.f32.mxu0 %v2104_v20 }
 0x190   : > { %v653_v53 = vpop.trf.xlu1 }
 0x191   : > { %1879 = vmatmul.mubr.msk.f32.gmra.mrb[12].mxu0 %vm695_vm1, %v653_v53 }
 0x192   : > { %898 = vmatprep.mubr.f32.mxu0 %v2104_v20 }
 0x194   : > { %v654_v54 = vpop.trf.xlu1 }
 0x195   : > { %1880 = vmatmul.mubr.msk.f32.gmra.mrb[14].mxu0 %vm695_vm1, %v654_v54 }
 0x196   : > { %904 = vmatprep.mubr.f32.mxu0 %v2104_v20 }
 0x198   : > { %v655_v55 = vpop.trf.xlu1 }
 0x199   : > { %1881 = vmatmul.mubr.msk.f32.gmra.mrb[16].mxu0 %vm695_vm1, %v655_v55 }
 0x19a   : > { %910 = vmatprep.mubr.f32.mxu0 %v2104_v20 }
 0x19c   : > { %v656_v56 = vpop.trf.xlu1 }
 0x19d   : > { %1882 = vmatmul.mubr.msk.f32.gmra.mrb[18].mxu0 %vm695_vm1, %v656_v56 }
 0x19e   : > { %916 = vmatprep.mubr.f32.mxu0 %v2104_v20 }
 0x1a0   : > { %v657_v57 = vpop.trf.xlu1 }
 0x1a1   : > { %1883 = vmatmul.mubr.msk.f32.gmra.mrb[20].mxu0 %vm695_vm1, %v657_v57 }
 0x1a2   : > { %922 = vmatprep.mubr.f32.mxu0 %v2104_v20 }
 0x1a4   : > { %v658_v58 = vpop.trf.xlu1 }
 0x1a5   : > { %1884 = vmatmul.mubr.msk.f32.gmra.mrb[22].mxu0 %vm695_vm1, %v658_v58 }
 0x1a6   : > { %928 = vmatprep.mubr.f32.mxu0 %v2104_v20 }
 0x1a8   : > { %v659_v59 = vpop.trf.xlu1 }
 0x1a9   : > { %1885 = vmatmul.mubr.msk.f32.gmra.mrb[24].mxu0 %vm695_vm1, %v659_v59 }
 0x1aa   : > { %934 = vmatprep.mubr.f32.mxu0 %v2104_v20 }
 0x1ac   : > { %v660_v60 = vpop.trf.xlu1 }
 0x1ad   : > { %1886 = vmatmul.mubr.msk.f32.gmra.mrb[26].mxu0 %vm695_vm1, %v660_v60 }
 0x1ae   : > { %940 = vmatprep.mubr.f32.mxu0 %v2104_v20 }
 0x1b0   : > { %v661_v61 = vpop.trf.xlu1 }
 0x1b1   : > { %1887 = vmatmul.mubr.msk.f32.gmra.mrb[28].mxu0 %vm695_vm1, %v661_v61 }
 0x1b2   : > { %946 = vmatprep.mubr.f32.mxu0 %v2104_v20 }
 0x1b4   : > { %v662_v62 = vpop.trf.xlu1 }
 0x1b5   : > { %1888 = vmatmul.mubr.msk.f32.gmra.mrb[30].mxu0 %vm695_vm1, %v662_v62 }
 0x1b6   : > { %952 = vmatprep.mubr.f32.mxu0 %v2104_v20 }
 0x1b8   : > { %v679_v63 = vpop.trf.xlu1 }
 0x1b9   : > { %1889 = vmatmul.mubr.msk.f32.gmra.mrb[32].mxu0 %vm695_vm1, %v679_v63 }
 0x1ba   : > { %958 = vmatprep.mubr.f32.mxu0 %v2104_v20 }
 0x1bc   : > { %v680_v0 = vpop.trf.xlu1 }
 0x1bd   : > { %1890 = vmatmul.mubr.msk.f32.gmra.mrb[34].mxu0 %vm695_vm1, %v680_v0 }
 0x1be   : > { %964 = vmatprep.mubr.f32.mxu0 %v2104_v20 }
 0x1c0   : > { %v681_v1 = vpop.trf.xlu1 }
 0x1c1   : > { %1891 = vmatmul.mubr.msk.f32.gmra.mrb[36].mxu0 %vm695_vm1, %v681_v1 }
 0x1c2   : > { %970 = vmatprep.mubr.f32.mxu0 %v2104_v20 }
 0x1c4   : > { %v682_v2 = vpop.trf.xlu1 }
 0x1c5   : > { %1892 = vmatmul.mubr.msk.f32.gmra.mrb[38].mxu0 %vm695_vm1, %v682_v2 }
 0x1c6   : > { %976 = vmatprep.mubr.f32.mxu0 %v2104_v20 }
 0x1c8   : > { %v683_v3 = vpop.trf.xlu1 }
 0x1c9   : > { %1893 = vmatmul.mubr.msk.f32.gmra.mrb[40].mxu0 %vm695_vm1, %v683_v3 }
 0x1ca   : > { %982 = vmatprep.mubr.f32.mxu0 %v2104_v20 }
 0x1cc   : > { %v684_v4 = vpop.trf.xlu1 }
 0x1cd   : > { %1894 = vmatmul.mubr.msk.f32.gmra.mrb[42].mxu0 %vm695_vm1, %v684_v4 }
 0x1ce   : > { %988 = vmatprep.mubr.f32.mxu0 %v2104_v20 }
 0x1d0   : > { %v685_v5 = vpop.trf.xlu1 }
 0x1d1   : > { %1895 = vmatmul.mubr.msk.f32.gmra.mrb[44].mxu0 %vm695_vm1, %v685_v5 }
 0x1d2   : > { %994 = vmatprep.mubr.f32.mxu0 %v2104_v20 }
 0x1d4   : > { %v686_v6 = vpop.trf.xlu1 }
 0x1d5   : > { %1896 = vmatmul.mubr.msk.f32.gmra.mrb[46].mxu0 %vm695_vm1, %v686_v6 }
 0x1d6   : > { %1000 = vmatprep.mubr.f32.mxu0 %v2104_v20 }
 0x1d8   : > { %v687_v7 = vpop.trf.xlu1 }
 0x1d9   : > { %1897 = vmatmul.mubr.msk.f32.gmra.mrb[48].mxu0 %vm695_vm1, %v687_v7 }
 0x1da   : > { %1006 = vmatprep.mubr.f32.mxu0 %v2104_v20 }
 0x1dc   : > { %v688_v8 = vpop.trf.xlu1 }
 0x1dd   : > { %1898 = vmatmul.mubr.msk.f32.gmra.mrb[50].mxu0 %vm695_vm1, %v688_v8 }
 0x1de   : > { %1012 = vmatprep.mubr.f32.mxu0 %v2104_v20 }
 0x1e0   : > { %v689_v9 = vpop.trf.xlu1 }
 0x1e1   : > { %1899 = vmatmul.mubr.msk.f32.gmra.mrb[52].mxu0 %vm695_vm1, %v689_v9 }
 0x1e2   : > { %1018 = vmatprep.mubr.f32.mxu0 %v2104_v20 }
 0x1e4   : > { %v690_v10 = vpop.trf.xlu1 }
 0x1e5   : > { %1900 = vmatmul.mubr.msk.f32.gmra.mrb[54].mxu0 %vm695_vm1, %v690_v10 }
 0x1e6   : > { %1024 = vmatprep.mubr.f32.mxu0 %v2104_v20 }
 0x1e8   : > { %v691_v11 = vpop.trf.xlu1 }
 0x1e9   : > { %1901 = vmatmul.mubr.msk.f32.gmra.mrb[56].mxu0 %vm695_vm1, %v691_v11 }
 0x1ea   : > { %1030 = vmatprep.mubr.f32.mxu0 %v2104_v20 }
 0x1ec   : > { %v692_v12 = vpop.trf.xlu1 }
 0x1ed   : > { %1902 = vmatmul.mubr.msk.f32.gmra.mrb[58].mxu0 %vm695_vm1, %v692_v12 }
 0x1ee   : > { %1036 = vmatprep.mubr.f32.mxu0 %v2104_v20 }
 0x1f0   : > { %v693_v13 = vpop.trf.xlu1 }
 0x1f1   : > { %1903 = vmatmul.mubr.msk.f32.gmra.mrb[60].mxu0 %vm695_vm1, %v693_v13 }
 0x1f2   : > { %1042 = vmatprep.mubr.f32.mxu0 %v2104_v20 }
 0x1f4   : > { %v694_v14 = vpop.trf.xlu1 }
 0x1f5   : > { %1904 = vmatmul.mubr.msk.f32.gmra.mrb[62].mxu0 %vm695_vm1, %v694_v14 }
 0x24c   : > { %v2284_v15 = vpop.f32.mrb[0].mxu0 }
 0x24d   : > { %v2286_v16 = vpop.f32.mrb[1].mxu0 }
 0x250   : > { %v2288_v17 = vpop.f32.mrb[2].mxu0 }
 0x251   : > { %v2290_v18 = vpop.f32.mrb[3].mxu0 }
 0x254   : > { %v2292_v19 = vpop.f32.mrb[4].mxu0 }
 0x255   : > { %v1050_v21 = vmax.f32 %v2284_v15, %v2292_v19  ;;  %v2296_v22 = vpop.f32.mrb[5].mxu0 }
 0x256   : > { %v1087_v24 = vmax.f32 %v2286_v16, %v2296_v22 }
 0x258   : > { %v2305_v26 = vpop.f32.mrb[6].mxu0 }
 0x259   : > { %v1051_v28 = vmax.f32 %v2288_v17, %v2305_v26  ;;  %v2314_v29 = vpop.f32.mrb[7].mxu0 }
 0x25a   : > { %v1088_v30 = vmax.f32 %v2290_v18, %v2314_v29 }
 0x25c   : > { %v2318_v31 = vpop.f32.mrb[8].mxu0 }
 0x25d   : > { %v1052_v32 = vmax.f32 %v1050_v21, %v2318_v31  ;;  %v2321_v33 = vpop.f32.mrb[9].mxu0 }
 0x25e   : > { %v1089_v34 = vmax.f32 %v1087_v24, %v2321_v33 }
 0x260   : > { %v2324_v35 = vpop.f32.mrb[10].mxu0 }
 0x261   : > { %v1053_v20 = vmax.f32 %v1051_v28, %v2324_v35  ;;  %v2327_v36 = vpop.f32.mrb[11].mxu0 }
 0x262   : > { %v1090_v39 = vmax.f32 %v1088_v30, %v2327_v36 }
 0x264   : > { %v2330_v40 = vpop.f32.mrb[12].mxu0 }
 0x265   : > { %v1054_v41 = vmax.f32 %v1052_v32, %v2330_v40  ;;  %v2333_v42 = vpop.f32.mrb[13].mxu0 }
 0x266   : > { %v1091_v44 = vmax.f32 %v1089_v34, %v2333_v42 }
 0x268   : > { %v2336_v45 = vpop.f32.mrb[14].mxu0 }
 0x269   : > { %v1055_v46 = vmax.f32 %v1053_v20, %v2336_v45  ;;  %v2339_v47 = vpop.f32.mrb[15].mxu0 }
 0x26a   : > { %v1092_v48 = vmax.f32 %v1090_v39, %v2339_v47 }
 0x26c   : > { %v2342_v49 = vpop.f32.mrb[16].mxu0 }
 0x26d   : > { %v1056_v50 = vmax.f32 %v1054_v41, %v2342_v49  ;;  %v2345_v51 = vpop.f32.mrb[17].mxu0 }
 0x26e   : > { %v1093_v52 = vmax.f32 %v1091_v44, %v2345_v51 }
 0x270   : > { %v2348_v53 = vpop.f32.mrb[18].mxu0 }
 0x271   : > { %v1057_v54 = vmax.f32 %v1055_v46, %v2348_v53  ;;  %v2351_v55 = vpop.f32.mrb[19].mxu0 }
 0x272   : > { %v1094_v56 = vmax.f32 %v1092_v48, %v2351_v55 }
 0x274   : > { %v2354_v57 = vpop.f32.mrb[20].mxu0 }
 0x275   : > { %v1058_v58 = vmax.f32 %v1056_v50, %v2354_v57  ;;  %v2357_v59 = vpop.f32.mrb[21].mxu0 }
 0x276   : > { %v1095_v60 = vmax.f32 %v1093_v52, %v2357_v59 }
 0x278   : > { %v2360_v61 = vpop.f32.mrb[22].mxu0 }
 0x279   : > { %v1059_v62 = vmax.f32 %v1057_v54, %v2360_v61  ;;  %v2363_v63 = vpop.f32.mrb[23].mxu0 }
 0x27a   : > { %v1096_v0 = vmax.f32 %v1094_v56, %v2363_v63 }
 0x27c   : > { %v2366_v1 = vpop.f32.mrb[24].mxu0 }
 0x27d   : > { %v1060_v2 = vmax.f32 %v1058_v58, %v2366_v1  ;;  %v2369_v3 = vpop.f32.mrb[25].mxu0 }
 0x27e   : > { %v1097_v4 = vmax.f32 %v1095_v60, %v2369_v3 }
 0x280   : > { %v2372_v5 = vpop.f32.mrb[26].mxu0 }
 0x281   : > { %v1061_v6 = vmax.f32 %v1059_v62, %v2372_v5  ;;  %v2375_v7 = vpop.f32.mrb[27].mxu0 }
 0x282   : > { %v1098_v8 = vmax.f32 %v1096_v0, %v2375_v7 }
 0x284   : > { %v2378_v9 = vpop.f32.mrb[28].mxu0 }
 0x285   : > { %v1062_v10 = vmax.f32 %v1060_v2, %v2378_v9  ;;  %v2381_v11 = vpop.f32.mrb[29].mxu0 }
 0x286   : > { %v1099_v12 = vmax.f32 %v1097_v4, %v2381_v11 }
 0x288   : > { %v2384_v13 = vpop.f32.mrb[30].mxu0 }
 0x289   : > { %v1063_v14 = vmax.f32 %v1061_v6, %v2384_v13  ;;  %v2387_v21 = vpop.f32.mrb[31].mxu0 }
 0x28a   : > { %v1100_v24 = vmax.f32 %v1098_v8, %v2387_v21 }
 0x28c   : > { %v2390_v27 = vpop.f32.mrb[32].mxu0 }
 0x28d   : > { %v1064_v28 = vmax.f32 %v1062_v10, %v2390_v27  ;;  %v2393_v30 = vpop.f32.mrb[33].mxu0 }
 0x28e   : > { %v1101_v32 = vmax.f32 %v1099_v12, %v2393_v30 }
 0x290   : > { %v2396_v34 = vpop.f32.mrb[34].mxu0 }
 0x291   : > { %v1065_v20 = vmax.f32 %v1063_v14, %v2396_v34  ;;  %v2399_v39 = vpop.f32.mrb[35].mxu0 }
 0x292   : > { %v1102_v41 = vmax.f32 %v1100_v24, %v2399_v39 }
 0x294   : > { %v2402_v44 = vpop.f32.mrb[36].mxu0 }
 0x295   : > { %v1066_v46 = vmax.f32 %v1064_v28, %v2402_v44  ;;  %v2405_v48 = vpop.f32.mrb[37].mxu0 }
 0x296   : > { %v1103_v50 = vmax.f32 %v1101_v32, %v2405_v48 }
 0x298   : > { %v2408_v52 = vpop.f32.mrb[38].mxu0 }
 0x299   : > { %2988 = vst [vmem:[#allocation10_spill] sm:$0xff] %v2408_v52  ;;  %v1067_v54 = vmax.f32 %v1065_v20, %v2408_v52  ;;  %v2411_v56 = vpop.f32.mrb[39].mxu0 }
 0x29a   : > { %2989 = vst [vmem:[#allocation11_spill] sm:$0xff] %v2411_v56  ;;  %v1104_v58 = vmax.f32 %v1102_v41, %v2411_v56 }
 0x29c   : > { %v2414_v60 = vpop.f32.mrb[40].mxu0 }
 0x29d   : > { %2990 = vst [vmem:[#allocation12_spill] sm:$0xff] %v2414_v60  ;;  %v1068_v62 = vmax.f32 %v1066_v46, %v2414_v60  ;;  %v2417_v0 = vpop.f32.mrb[41].mxu0 }
 0x29e   : > { %2991 = vst [vmem:[#allocation13_spill] sm:$0xff] %v2417_v0  ;;  %v1105_v2 = vmax.f32 %v1103_v50, %v2417_v0  ;;  %v3013_v0 = vlaneseq }
 0x2a0   : > { %v2420_v4 = vpop.f32.mrb[42].mxu0  ;;  %v1131_v60 = vshrl.u32 %v3013_v0, 7 }
 0x2a1   : > { %2992 = vst [vmem:[#allocation14_spill] sm:$0xff] %v2420_v4  ;;  %v1069_v6 = vmax.f32 %v1067_v54, %v2420_v4  ;;  %v2423_v8 = vpop.f32.mrb[43].mxu0 }
 0x2a2   : > { %2993 = vst [vmem:[#allocation15_spill] sm:$0xff] %v2423_v8  ;;  %v1106_v10 = vmax.f32 %v1104_v58, %v2423_v8 }
 0x2a4   : > { %v2426_v12 = vpop.f32.mrb[44].mxu0 }
 0x2a5   : > { %2994 = vst [vmem:[#allocation16_spill] sm:$0xff] %v2426_v12  ;;  %v1070_v14 = vmax.f32 %v1068_v62, %v2426_v12  ;;  %v2429_v24 = vpop.f32.mrb[45].mxu0  ;;  %v2106_v12 = vmov 1966171168  }
 0x2a6   : > { %2995 = vst [vmem:[#allocation17_spill] sm:$0xff] %v2429_v24  ;;  %v1107_v28 = vmax.f32 %v1105_v2, %v2429_v24 }
 0x2a8   : > { %v2432_v32 = vpop.f32.mrb[46].mxu0 }
 0x2a9   : > { %2996 = vst [vmem:[#allocation18_spill] sm:$0xff] %v2432_v32  ;;  %v1071_v20 = vmax.f32 %v1069_v6, %v2432_v32  ;;  %v2435_v41 = vpop.f32.mrb[47].mxu0 }
 0x2aa   : > { %2997 = vst [vmem:[#allocation19_spill] sm:$0xff] %v2435_v41  ;;  %v1108_v46 = vmax.f32 %v1106_v10, %v2435_v41 }
 0x2ac   : > { %v2438_v50 = vpop.f32.mrb[48].mxu0  ;;  %v3025_v0 = vld [vmem:[#allocation16_spill] sm:$0xff] }
 0x2ad   : > { %2998 = vst [vmem:[#allocation20_spill] sm:$0xff] %v2438_v50  ;;  %v1072_v54 = vmax.f32 %v1070_v14, %v2438_v50  ;;  %v2441_v58 = vpop.f32.mrb[49].mxu0 }
 0x2ae   : > { %2999 = vst [vmem:[#allocation21_spill] sm:$0xff] %v2441_v58  ;;  %v1109_v62 = vmax.f32 %v1107_v28, %v2441_v58 }
 0x2b0   : > { %v2444_v43 = vpop.f32.mrb[50].mxu0 }
 0x2b1   : > { %3000 = vst [vmem:[#allocation22_spill] sm:$0xff] %v2444_v43  ;;  %v1073_v2 = vmax.f32 %v1071_v20, %v2444_v43  ;;  %v2447_v23 = vpop.f32.mrb[51].mxu0 }
 0x2b2   : > { %3001 = vst [vmem:[#allocation23_spill] sm:$0xff] %v2447_v23  ;;  %v1110_v6 = vmax.f32 %v1108_v46, %v2447_v23 }
 0x2b4   : > { %v2450_v37 = vpop.f32.mrb[52].mxu0 }
 0x2b5   : > { %3002 = vst [vmem:[#allocation24_spill] sm:$0xff] %v2450_v37  ;;  %v1074_v10 = vmax.f32 %v1072_v54, %v2450_v37  ;;  %v2453_v38 = vpop.f32.mrb[53].mxu0 }
 0x2b6   : > { %3003 = vst [vmem:[#allocation25_spill] sm:$0xff] %v2453_v38  ;;  %v1111_v14 = vmax.f32 %v1109_v62, %v2453_v38 }
 0x2b8   : > { %v2456_v50 = vpop.f32.mrb[54].mxu0 }
 0x2b9   : > { %3004 = vst [vmem:[#allocation26_spill] sm:$0xff] %v2456_v50  ;;  %v1075_v28 = vmax.f32 %v1073_v2, %v2456_v50  ;;  %v2459_v58 = vpop.f32.mrb[55].mxu0 }
 0x2ba   : > { %3005 = vst [vmem:[#allocation27_spill] sm:$0xff] %v2459_v58  ;;  %v1112_v20 = vmax.f32 %v1110_v6, %v2459_v58 }
 0x2bc   : > { %v2462_v43 = vpop.f32.mrb[56].mxu0 }
 0x2bd   : > { %3006 = vst [vmem:[#allocation28_spill] sm:$0xff] %v2462_v43  ;;  %v1076_v46 = vmax.f32 %v1074_v10, %v2462_v43  ;;  %v2465_v23 = vpop.f32.mrb[57].mxu0 }
 0x2be   : > { %3007 = vst [vmem:[#allocation29_spill] sm:$0xff] %v2465_v23  ;;  %v1113_v54 = vmax.f32 %v1111_v14, %v2465_v23 }
 0x2c0   : > { %v2468_v37 = vpop.f32.mrb[58].mxu0 }
 0x2c1   : > { %3008 = vst [vmem:[#allocation30_spill] sm:$0xff] %v2468_v37  ;;  %v1077_v62 = vmax.f32 %v1075_v28, %v2468_v37  ;;  %v2471_v38 = vpop.f32.mrb[59].mxu0 }
 0x2c2   : > { %3009 = vst [vmem:[#allocation31_spill] sm:$0xff] %v2471_v38  ;;  %v1114_v2 = vmax.f32 %v1112_v20, %v2471_v38 }
 0x2c4   : > { %v2474_v50 = vpop.f32.mrb[60].mxu0 }
 0x2c5   : > { %3010 = vst [vmem:[#allocation32_spill] sm:$0xff] %v2474_v50  ;;  %v1078_v6 = vmax.f32 %v1076_v46, %v2474_v50  ;;  %v2477_v58 = vpop.f32.mrb[61].mxu0  ;;  %v1128_v46 = vunpack.c.l.s4 %v2106_v12 }
 0x2c6   : > { %3011 = vst [vmem:[#allocation33_spill] sm:$0xff] %v2477_v58  ;;  %v1115_v10 = vmax.f32 %v1113_v54, %v2477_v58 }
 0x2c7   : > { %v1129_v58 = vunpack.c.0.s8 %v1128_v46  ;;  %v3019_v46 = vld [vmem:[#allocation10_spill] sm:$0xff] }
 0x2c8   : > { %v2480_v43 = vpop.f32.mrb[62].mxu0 }
 0x2c9   : > { %3012 = vst [vmem:[#allocation34_spill] sm:$0xff] %v2480_v43  ;;  %v1079_v14 = vmax.f32 %v1077_v62, %v2480_v43  ;;  %v2483_v23 = vpop.f32.mrb[63].mxu0 }
 0x2ca   : > { %v1116_v28 = vmax.f32 %v1114_v2, %v2483_v23  ;;  %v2487_v2 = vsub.s32 %v1129_v58, %v1131_v60 }
 0x2cb   : > { %v1080_v37 = vmax.f32 %v1078_v6, %v1079_v14 }
 0x2cc   : > { %v1117_v41 = vmax.f32 %v1115_v10, %v1116_v28  ;;  %3014 = vst [vmem:[#allocation35_spill] sm:$0xff] %v2487_v2  ;;  %v3027_v28 = vld [vmem:[#allocation18_spill] sm:$0xff] }
 0x2cd   : > { %v1081_v32 = vrot.slane %v1080_v37, 4 }
 0x2ce   : > { %v1118_v20 = vrot.slane %v1117_v41, 4 }
 0x2cf   : > { %v1082_v38 = vmax.f32 %v1080_v37, %v1081_v32  ;;  %v2490_v37 = vld [vmem:[#allocation3] sm:$0x3]  ;;  %v2493_v32 = vsub.s32 0, %v1131_v60 }
 0x2d0   : > { %v1119_v24 = vmax.f32 %v1117_v41, %v1118_v20  ;;  %3015 = vst [vmem:[#allocation36_spill] sm:$0xff] %v2490_v37  ;;  %v3026_v20 = vld [vmem:[#allocation17_spill] sm:$0xff]  ;;  %v3043_v58 = vld [vmem:[#allocation34_spill] sm:$0xff] }
 0x2d1   : > { %v1083_v50 = vrot.slane %v1082_v38, 2  ;;  %3016 = vst [vmem:[#allocation37_spill] sm:$0xff] %v2493_v32 }
 0x2d2   : > { %v1120_v8 = vrot.slane %v1119_v24, 2 }
 0x2d3   : > { %v1084_v4 = vmax.f32 %v1082_v38, %v1083_v50  ;;  %v2495_v38 = vsub.s32 1, %v1131_v60 }
 0x2d4   : > { %v1121_v54 = vmax.f32 %v1119_v24, %v1120_v8 }
 0x2d5   : > { %v1085_v62 = vrot.slane %v1084_v4, 1  ;;  %3017 = vst [vmem:[#allocation38_spill] sm:$0xff] %v2495_v38 }
 0x2d6   : > { %v1122_v43 = vrot.slane %v1121_v54, 1 }
 0x2d7   : > { %v1086_v56 = vmax.f32 %v1084_v4, %v1085_v62  ;;  %v3021_v62 = vld [vmem:[#allocation12_spill] sm:$0xff] }
 0x2d8   : > { %v1123_v52 = vmax.f32 %v1121_v54, %v1122_v43  ;;  %v3020_v54 = vld [vmem:[#allocation11_spill] sm:$0xff] }
 0x2da   : > { %v1126_v6 = vcombine.low %v1086_v56, %v1123_v52 }
 0x2dc   : > { %v1133_v10 = vrot.slane %v1126_v6, %v2487_v2  ;;  %v3022_v6 = vld [vmem:[#allocation13_spill] sm:$0xff] }
 0x2de   : > { %v1140_v12 = vrot.slane %v1133_v10, %v2487_v2  ;;  %v3023_v10 = vld [vmem:[#allocation14_spill] sm:$0xff] }
 0x2df   : > { %v3039_v2 = vld [vmem:[#allocation30_spill] sm:$0xff] }
 0x2e0   : > { %v2498_v8 = vmax.f32 %v2490_v37, %v1140_v12  ;;  %v3024_v12 = vld [vmem:[#allocation15_spill] sm:$0xff] }
 0x2e2   : > { %3018 = vst [vmem:[#allocation39_spill] sm:$0xff] %v2498_v8  ;;  %v2504_v43 = vrot.slane %v2498_v8, %v2493_v32  ;;  %v2508_v52 = vrot.slane %v2498_v8, %v2495_v38  ;;  %1553 = vst.msk [vmem:[#allocation3] sm:$0x3] %vm2301_vm2, %v2498_v8  ;;  %v3037_v32 = vld [vmem:[#allocation28_spill] sm:$0xff]  ;;  %v3040_v8 = vld [vmem:[#allocation31_spill] sm:$0xff] }
 0x2e4   : > { %v3044_v41 = vsub.f32 %v2284_v15, %v2504_v43  ;;  %v3045_v24 = vsub.f32 %v2286_v16, %v2508_v52  ;;  %v3046_v60 = vsub.f32 %v2288_v17, %v2504_v43  ;;  %v3047_v56 = vsub.f32 %v2290_v18, %v2508_v52 }
 0x2e5   : > { %v3048_v50 = vsub.f32 %v2292_v19, %v2504_v43  ;;  %v3049_v15 = vsub.f32 %v2296_v22, %v2508_v52  ;;  %v3050_v16 = vsub.f32 %v2305_v26, %v2504_v43  ;;  %v3051_v18 = vsub.f32 %v2314_v29, %v2508_v52 }
 0x2e6   : > { %v1221_v25 = vmul.f32 1.442695, %v3044_v41  ;;  %v1223_v4 = vmul.f32 1.442695, %v3045_v24  ;;  %v1225_v37 = vmul.f32 1.442695, %v3046_v60  ;;  %v3052_v19 = vsub.f32 %v2318_v31, %v2504_v43 }
 0x2e7   : > { %v1227_v14 = vmul.f32 1.442695, %v3047_v56  ;;  %v1229_v38 = vmul.f32 1.442695, %v3048_v50  ;;  %v1231_v41 = vmul.f32 1.442695, %v3049_v15  ;;  %v3053_v22 = vsub.f32 %v2321_v33, %v2508_v52 }
 0x2e8   : > { %1947 = vpow2.f32 %v1221_v25  ;;  %v1233_v17 = vmul.f32 1.442695, %v3050_v16  ;;  %v1235_v56 = vmul.f32 1.442695, %v3051_v18  ;;  %v1237_v25 = vmul.f32 1.442695, %v3052_v19 }
 0x2e9   : > { %1949 = vpow2.f32 %v1223_v4  ;;  %v1239_v60 = vmul.f32 1.442695, %v3053_v22  ;;  %v3054_v26 = vsub.f32 %v2324_v35, %v2504_v43  ;;  %v3055_v29 = vsub.f32 %v2327_v36, %v2508_v52 }
 0x2ea   : > { %1951 = vpow2.f32 %v1225_v37  ;;  %v3056_v31 = vsub.f32 %v2330_v40, %v2504_v43  ;;  %v3057_v33 = vsub.f32 %v2333_v42, %v2508_v52  ;;  %v3058_v35 = vsub.f32 %v2336_v45, %v2504_v43 }
 0x2eb   : > { %1953 = vpow2.f32 %v1227_v14  ;;  %v1241_v37 = vmul.f32 1.442695, %v3054_v26  ;;  %v1243_v4 = vmul.f32 1.442695, %v3055_v29  ;;  %v3059_v36 = vsub.f32 %v2339_v47, %v2508_v52 }
 0x2ec   : > { %1955 = vpow2.f32 %v1229_v38  ;;  %v1245_v38 = vmul.f32 1.442695, %v3056_v31  ;;  %v1247_v24 = vmul.f32 1.442695, %v3057_v33  ;;  %v1249_v14 = vmul.f32 1.442695, %v3058_v35 }
 0x2ed   : > { %1957 = vpow2.f32 %v1231_v41  ;;  %v1251_v41 = vmul.f32 1.442695, %v3059_v36  ;;  %v3060_v40 = vsub.f32 %v2342_v49, %v2504_v43  ;;  %v3061_v18 = vsub.f32 %v2345_v51, %v2508_v52 }
 0x2ee   : > { %1959 = vpow2.f32 %v1233_v17  ;;  %v3062_v19 = vsub.f32 %v2348_v53, %v2504_v43  ;;  %v3063_v22 = vsub.f32 %v2351_v55, %v2508_v52  ;;  %v3064_v26 = vsub.f32 %v2354_v57, %v2504_v43 }
 0x2ef   : > { %1961 = vpow2.f32 %v1235_v56  ;;  %v1253_v17 = vmul.f32 1.442695, %v3060_v40  ;;  %v1255_v56 = vmul.f32 1.442695, %v3061_v18  ;;  %v3065_v29 = vsub.f32 %v2357_v59, %v2508_v52 }
 0x2f0   : > { %1963 = vpow2.f32 %v1237_v25  ;;  %v1257_v25 = vmul.f32 1.442695, %v3062_v19  ;;  %v3066_v31 = vsub.f32 %v2360_v61, %v2504_v43  ;;  %v3068_v57 = vsub.f32 %v2366_v1, %v2504_v43 }
 0x2f1   : > { %1965 = vpow2.f32 %v1239_v60  ;;  %v1259_v60 = vmul.f32 1.442695, %v3063_v22  ;;  %v3069_v59 = vsub.f32 %v2369_v3, %v2508_v52  ;;  %v3070_v36 = vsub.f32 %v2372_v5, %v2504_v43 }
 0x2f2   : > { %v1948_v50 = vpop.eup %1947  ;;  %1967 = vpow2.f32 %v1241_v37  ;;  %v1261_v37 = vmul.f32 1.442695, %v3064_v26  ;;  %v1265_v55 = vmul.f32 1.442695, %v3066_v31 }
 0x2f3   : > { %v1950_v15 = vpop.eup %1949  ;;  %1969 = vpow2.f32 %v1243_v4  ;;  %v1263_v4 = vmul.f32 1.442695, %v3065_v29 }
 0x2f4   : > { %v1952_v16 = vpop.eup %1951  ;;  %1971 = vpow2.f32 %v1245_v38  ;;  %v3067_v38 = vsub.f32 %v2363_v63, %v2508_v52 }
 0x2f5   : > { %v1954_v42 = vpop.eup %1953  ;;  %1973 = vpow2.f32 %v1247_v24  ;;  %v1269_v24 = vmul.f32 1.442695, %v3068_v57  ;;  %v1351_v61 = vadd.f32 %v1952_v16, %v1948_v50  ;;  %v1470_v18 = vpack.c.bf16 %v1952_v16, %v1948_v50 }
 0x2f6   : > { %v1956_v45 = vpop.eup %1955  ;;  %1975 = vpow2.f32 %v1249_v14  ;;  %v1267_v33 = vmul.f32 1.442695, %v3067_v38  ;;  %v1271_v14 = vmul.f32 1.442695, %v3069_v59  ;;  %v1471_v63 = vpack.c.bf16 %v1954_v42, %v1950_v15 }
 0x2f7   : > { %v1958_v47 = vpop.eup %1957  ;;  %1977 = vpow2.f32 %v1251_v41  ;;  %v1273_v41 = vmul.f32 1.442695, %v3070_v36  ;;  %v1352_v1 = vadd.f32 %v1956_v45, %v1351_v61  ;;  %v3074_v38 = vsub.f32 %v2384_v13, %v2504_v43 }
 0x2f8   : > { %v1960_v49 = vpop.eup %1959  ;;  %1979 = vpow2.f32 %v1253_v17  ;;  %v1388_v17 = vadd.f32 %v1954_v42, %v1950_v15  ;;  %1502 = vmatprep.subr.bf16.mxu1 %v1471_v63  ;;  %v3072_v42 = vsub.f32 %v2378_v9, %v2504_v43  ;;  %v3078_v63 = vsub.f32 %v2396_v34, %v2504_v43 }
 0x2f9   : > { %v1962_v51 = vpop.eup %1961  ;;  %1981 = vpow2.f32 %v1255_v56  ;;  %v1353_v50 = vadd.f32 %v1960_v49, %v1352_v1  ;;  %1503 = vmatpush1.bf16.msra.mxu1 %v1470_v18  ;;  %v1281_v9 = vmul.f32 1.442695, %v3074_v38 }
 0x2fa   : > { %v2707_v53 = vpop.eup %1963  ;;  %1983 = vpow2.f32 %v1257_v25  ;;  %v1473_v19 = vpack.c.bf16 %v1962_v51, %v1958_v47  ;;  %v1472_v25 = vpack.c.bf16 %v1960_v49, %v1956_v45  ;;  %v1389_v3 = vadd.f32 %v1958_v47, %v1388_v17 }
 0x2fb   : > { %v1966_v35 = vpop.eup %1965  ;;  %1985 = vpow2.f32 %v1259_v60  ;;  %v1277_v45 = vmul.f32 1.442695, %v3072_v42 }
 0x2fc   : > { %v1968_v40 = vpop.eup %1967  ;;  %1987 = vpow2.f32 %v1261_v37  ;;  %v3071_v37 = vsub.f32 %v2375_v7, %v2508_v52  ;;  %v1390_v29 = vadd.f32 %v1962_v51, %v1389_v3  ;;  %1504 = vmatprep.subr.bf16.mxu1 %v1473_v19  ;;  %v3079_v19 = vsub.f32 %v2399_v39, %v2508_v52 }
 0x2fd   : > { %v1970_v56 = vpop.eup %1969  ;;  %1989 = vpow2.f32 %v1263_v4  ;;  %v1474_v5 = vpack.c.bf16 %v1968_v40, %v2707_v53  ;;  %v3073_v4 = vsub.f32 %v2381_v11, %v2508_v52  ;;  %1505 = vmatpush1.bf16.msra.mxu1 %v1472_v25  ;;  %v3080_v3 = vsub.f32 %v2402_v44, %v2504_v43 }
 0x2fe   : > { %v2724_v22 = vpop.eup %1971  ;;  %1991 = vpow2.f32 %v1265_v55  ;;  %v1475_v60 = vpack.c.bf16 %v1970_v56, %v1966_v35  ;;  %v1275_v15 = vmul.f32 1.442695, %v3071_v37  ;;  %v1354_v55 = vadd.f32 %v2707_v53, %v1353_v50 }
 0x2ff   : > { %v1974_v26 = vpop.eup %1973  ;;  %1993 = vpow2.f32 %v1267_v33  ;;  %v1279_v31 = vmul.f32 1.442695, %v3073_v4  ;;  %v1391_v33 = vadd.f32 %v1966_v35, %v1390_v29  ;;  %v3077_v35 = vsub.f32 %v2393_v30, %v2508_v52 }
 0x300   : > { %v1976_v16 = vpop.eup %1975  ;;  %1995 = vpow2.f32 %v1269_v24  ;;  %v3075_v24 = vsub.f32 %v2387_v21, %v2508_v52  ;;  %v1355_v59 = vadd.f32 %v1968_v40, %v1354_v55  ;;  %1506 = vmatprep.subr.bf16.mxu1 %v1475_v60  ;;  %v1291_v30 = vmul.f32 1.442695, %v3079_v19 }
 0x301   : > { %v1978_v47 = vpop.eup %1977  ;;  %1997 = vpow2.f32 %v1271_v14  ;;  %v1476_v7 = vpack.c.bf16 %v1976_v16, %v2724_v22  ;;  %v3076_v14 = vsub.f32 %v2390_v27, %v2504_v43  ;;  %v1287_v61 = vmul.f32 1.442695, %v3077_v35  ;;  %1507 = vmatpush1.bf16.msra.mxu1 %v1474_v5 }
 0x302   : > { %v2738_v49 = vpop.eup %1979  ;;  %1999 = vpow2.f32 %v1273_v41  ;;  %v1477_v51 = vpack.c.bf16 %v1978_v47, %v1974_v26  ;;  %v1283_v11 = vmul.f32 1.442695, %v3075_v24  ;;  %v1392_v41 = vadd.f32 %v1970_v56, %v1391_v33 }
 0x303   : > { %v1982_v57 = vpop.eup %1981  ;;  %2001 = vpow2.f32 %v1275_v15  ;;  %v1285_v36 = vmul.f32 1.442695, %v3076_v14  ;;  %v1356_v17 = vadd.f32 %v2724_v22, %v1355_v59  ;;  %v1289_v27 = vmul.f32 1.442695, %v3078_v63 }
 0x304   : > { %v1984_v53 = vpop.eup %1983  ;;  %2003 = vpow2.f32 %v1277_v45  ;;  %v1393_v18 = vadd.f32 %v1974_v26, %v1392_v41  ;;  %v1293_v60 = vmul.f32 1.442695, %v3080_v3  ;;  %1508 = vmatprep.subr.bf16.mxu1 %v1477_v51  ;;  %v3081_v26 = vsub.f32 %v2405_v48, %v2508_v52 }
 0x305   : > { %v1986_v13 = vpop.eup %1985  ;;  %2005 = vpow2.f32 %v1279_v31  ;;  %v1478_v21 = vpack.c.bf16 %v1984_v53, %v2738_v49  ;;  %v1357_v25 = vadd.f32 %v1976_v16, %v1356_v17  ;;  %v3082_v5 = vsub.f32 %v3019_v46, %v2504_v43  ;;  %1509 = vmatpush1.bf16.msra.mxu1 %v1476_v7 }
 0x306   : > { %v2754_v40 = vpop.eup %1987  ;;  %2007 = vpow2.f32 %v1281_v9  ;;  %v1479_v56 = vpack.c.bf16 %v1986_v13, %v1982_v57  ;;  %v1394_v37 = vadd.f32 %v1978_v47, %v1393_v18  ;;  %v1295_v15 = vmul.f32 1.442695, %v3081_v26 }
 0x307   : > { %v1990_v1 = vpop.eup %1989  ;;  %2009 = vpow2.f32 %v1283_v11  ;;  %v1358_v50 = vadd.f32 %v2738_v49, %v1357_v25  ;;  %v1297_v44 = vmul.f32 1.442695, %v3082_v5  ;;  %v3083_v47 = vsub.f32 %v3020_v54, %v2508_v52 }
 0x308   : > { %v1992_v22 = vpop.eup %1991  ;;  %2011 = vpow2.f32 %v1285_v36  ;;  %v1395_v42 = vadd.f32 %v1982_v57, %v1394_v37  ;;  %v3084_v55 = vsub.f32 %v3021_v62, %v2504_v43  ;;  %1510 = vmatprep.subr.bf16.mxu1 %v1479_v56  ;;  %v3085_v9 = vsub.f32 %v3022_v6, %v2508_v52 }
 0x309   : > { %v1994_v34 = vpop.eup %1993  ;;  %2013 = vpow2.f32 %v1287_v61  ;;  %v1480_v39 = vpack.c.bf16 %v1992_v22, %v2754_v40  ;;  %v1299_v48 = vmul.f32 1.442695, %v3083_v47  ;;  %v1359_v4 = vadd.f32 %v1984_v53, %v1358_v50  ;;  %1511 = vmatpush1.bf16.msra.mxu1 %v1478_v21 }
 0x30a   : > { %v2770_v16 = vpop.eup %1995  ;;  %2015 = vpow2.f32 %v1289_v27  ;;  %v1481_v45 = vpack.c.bf16 %v1994_v34, %v1990_v1  ;;  %v1301_v49 = vmul.f32 1.442695, %v3084_v55  ;;  %v1396_v38 = vadd.f32 %v1986_v13, %v1395_v42 }
 0x30b   : > { %v1998_v29 = vpop.eup %1997  ;;  %2017 = vpow2.f32 %v1291_v30  ;;  %v1303_v33 = vmul.f32 1.442695, %v3085_v9  ;;  %v1360_v51 = vadd.f32 %v2754_v40, %v1359_v4  ;;  %v3086_v7 = vsub.f32 %v3023_v10, %v2504_v43 }
 0x30c   : > { %v2000_v31 = vpop.eup %1999  ;;  %2019 = vpow2.f32 %v1293_v60  ;;  %v1397_v24 = vadd.f32 %v1990_v1, %v1396_v38  ;;  %v3087_v53 = vsub.f32 %v3024_v12, %v2508_v52  ;;  %v3088_v41 = vsub.f32 %v3025_v0, %v2504_v43  ;;  %1512 = vmatprep.subr.bf16.mxu1 %v1481_v45  ;;  %v3091_v1 = vld [vmem:[#allocation19_spill] sm:$0xff]  ;;  %v3101_v38 = vld [vmem:[#allocation24_spill] sm:$0xff] }
 0x30d   : > { %v2002_v46 = vpop.eup %2001  ;;  %2021 = vpow2.f32 %v1295_v15  ;;  %v1482_v54 = vpack.c.bf16 %v2000_v31, %v2770_v16  ;;  %v1305_v62 = vmul.f32 1.442695, %v3086_v7  ;;  %v1361_v14 = vadd.f32 %v1992_v22, %v1360_v51  ;;  %1513 = vmatpush1.bf16.msra.mxu1 %v1480_v39  ;;  %v3093_v22 = vld [vmem:[#allocation20_spill] sm:$0xff]  ;;  %v3097_v39 = vld [vmem:[#allocation22_spill] sm:$0xff] }
 0x30e   : > { %v2786_v57 = vpop.eup %2003  ;;  %2023 = vpow2.f32 %v1297_v44  ;;  %v1483_v11 = vpack.c.bf16 %v2002_v46, %v1998_v29  ;;  %v1307_v6 = vmul.f32 1.442695, %v3087_v53  ;;  %v1309_v13 = vmul.f32 1.442695, %v3088_v41 }
 0x30f   : > { %v2006_v59 = vpop.eup %2005  ;;  %2025 = vpow2.f32 %v1299_v48  ;;  %v1398_v35 = vadd.f32 %v1994_v34, %v1397_v24  ;;  %v3089_v61 = vsub.f32 %v3026_v20, %v2508_v52  ;;  %v1362_v40 = vadd.f32 %v2770_v16, %v1361_v14  ;;  %v3095_v34 = vld [vmem:[#allocation21_spill] sm:$0xff]  ;;  %v3099_v48 = vld [vmem:[#allocation23_spill] sm:$0xff] }
 0x310   : > { %v2008_v36 = vpop.eup %2007  ;;  %2027 = vpow2.f32 %v1301_v49  ;;  %v3090_v21 = vsub.f32 %v3027_v28, %v2504_v43  ;;  %v3092_v19 = vsub.f32 %v3091_v1, %v2508_v52  ;;  %v3094_v3 = vsub.f32 %v3093_v22, %v2504_v43  ;;  %1514 = vmatprep.subr.bf16.mxu1 %v1483_v11 }
 0x311   : > { %v2010_v10 = vpop.eup %2009  ;;  %2029 = vpow2.f32 %v1303_v33  ;;  %v1311_v17 = vmul.f32 1.442695, %v3089_v61  ;;  %v1484_v12 = vpack.c.bf16 %v2008_v36, %v2786_v57  ;;  %v1399_v27 = vadd.f32 %v1998_v29, %v1398_v35  ;;  %1515 = vmatpush1.bf16.msra.mxu1 %v1482_v54  ;;  %v3105_v54 = vld [vmem:[#allocation26_spill] sm:$0xff] }
 0x312   : > { %v2802_v63 = vpop.eup %2011  ;;  %2031 = vpow2.f32 %v1305_v62  ;;  %v1313_v0 = vmul.f32 1.442695, %v3090_v21  ;;  %v1485_v18 = vpack.c.bf16 %v2010_v10, %v2006_v59  ;;  %v1315_v20 = vmul.f32 1.442695, %v3092_v19 }
 0x313   : > { %v2014_v56 = vpop.eup %2013  ;;  %2033 = vpow2.f32 %v1307_v6  ;;  %v1363_v30 = vadd.f32 %v2000_v31, %v1362_v40  ;;  %v1317_v60 = vmul.f32 1.442695, %v3094_v3  ;;  %v1400_v37 = vadd.f32 %v2002_v46, %v1399_v27  ;;  %v3110_v27 = vld [vmem:[#allocation29_spill] sm:$0xff] }
 0x314   : > { %v2016_v25 = vpop.eup %2015  ;;  %2035 = vpow2.f32 %v1309_v13  ;;  %v3096_v26 = vsub.f32 %v3095_v34, %v2508_v52  ;;  %v3098_v44 = vsub.f32 %v3097_v39, %v2504_v43  ;;  %v3100_v4 = vsub.f32 %v3099_v48, %v2508_v52  ;;  %1516 = vmatprep.subr.bf16.mxu1 %v1485_v18  ;;  %v3107_v13 = vld [vmem:[#allocation27_spill] sm:$0xff]  ;;  %v3114_v34 = vld [vmem:[#allocation32_spill] sm:$0xff] }
 0x315   : > { %v2018_v28 = vpop.eup %2017  ;;  %2037 = vpow2.f32 %v1311_v17  ;;  %v1364_v50 = vadd.f32 %v2786_v57, %v1363_v30  ;;  %v1486_v16 = vpack.c.bf16 %v2016_v25, %v2802_v63  ;;  %v1401_v45 = vadd.f32 %v2006_v59, %v1400_v37  ;;  %v3103_v57 = vld [vmem:[#allocation25_spill] sm:$0xff]  ;;  %1517 = vmatpush1.bf16.msra.mxu1 %v1484_v12 }
 0x316   : > { %v1319_v15 = vmul.f32 1.442695, %v3096_v26  ;;  %v2818_v5 = vpop.eup %2019  ;;  %2039 = vpow2.f32 %v1313_v0  ;;  %v1321_v42 = vmul.f32 1.442695, %v3098_v44  ;;  %v1487_v29 = vpack.c.bf16 %v2018_v28, %v2014_v56 }
 0x317   : > { %v2022_v47 = vpop.eup %2021  ;;  %2041 = vpow2.f32 %v1315_v20  ;;  %v1323_v31 = vmul.f32 1.442695, %v3100_v4  ;;  %v1365_v55 = vadd.f32 %v2008_v36, %v1364_v50  ;;  %v3102_v46 = vsub.f32 %v3101_v38, %v2504_v43 }
 0x318   : > { %v2024_v49 = vpop.eup %2023  ;;  %2043 = vpow2.f32 %v1317_v60  ;;  %v1402_v33 = vadd.f32 %v2010_v10, %v1401_v45  ;;  %v3104_v7 = vsub.f32 %v3103_v57, %v2508_v52  ;;  %v3106_v53 = vsub.f32 %v3105_v54, %v2504_v43  ;;  %1518 = vmatprep.subr.bf16.mxu1 %v1487_v29 }
 0x319   : > { %v1325_v9 = vmul.f32 1.442695, %v3102_v46  ;;  %v2026_v51 = vpop.eup %2025  ;;  %2045 = vpow2.f32 %v1319_v15  ;;  %v1366_v24 = vadd.f32 %v2802_v63, %v1365_v55  ;;  %v1488_v11 = vpack.c.bf16 %v2024_v49, %v2818_v5  ;;  %1519 = vmatpush1.bf16.msra.mxu1 %v1486_v16 }
 0x31a   : > { %v1327_v62 = vmul.f32 1.442695, %v3104_v7  ;;  %v2834_v59 = vpop.eup %2027  ;;  %2047 = vpow2.f32 %v1321_v42  ;;  %v1329_v6 = vmul.f32 1.442695, %v3106_v53  ;;  %v1403_v14 = vadd.f32 %v2014_v56, %v1402_v33 }
 0x31b   : > { %v1489_v36 = vpack.c.bf16 %v2026_v51, %v2022_v47  ;;  %v2030_v41 = vpop.eup %2029  ;;  %2049 = vpow2.f32 %v1323_v31  ;;  %v3108_v35 = vsub.f32 %v3107_v13, %v2508_v52  ;;  %v1367_v61 = vadd.f32 %v2016_v25, %v1366_v24 }
 0x31c   : > { %v2032_v17 = vpop.eup %2031  ;;  %2051 = vpow2.f32 %v1325_v9  ;;  %v3109_v40 = vsub.f32 %v3037_v32, %v2504_v43  ;;  %v1404_v21 = vadd.f32 %v2018_v28, %v1403_v14  ;;  %v3111_v18 = vsub.f32 %v3110_v27, %v2508_v52 }
 0x31d   : > { %v1331_v10 = vmul.f32 1.442695, %v3108_v35  ;;  %v2034_v0 = vpop.eup %2033  ;;  %2053 = vpow2.f32 %v1327_v62  ;;  %v1368_v1 = vadd.f32 %v2818_v5, %v1367_v61  ;;  %v1490_v19 = vpack.c.bf16 %v2032_v17, %v2834_v59  ;;  %1520 = vmatprep.subr.bf16.mxu1 %v1489_v36  ;;  %v3116_v5 = vld [vmem:[#allocation33_spill] sm:$0xff] }
 0x31e   : > { %v1333_v63 = vmul.f32 1.442695, %v3109_v40  ;;  %v1335_v56 = vmul.f32 1.442695, %v3111_v18  ;;  %v2036_v20 = vpop.eup %2035  ;;  %2055 = vpow2.f32 %v1329_v6  ;;  %v3112_v12 = vsub.f32 %v3039_v2, %v2504_v43  ;;  %1521 = vmatpush1.bf16.msra.mxu1 %v1488_v11 }
 0x31f   : > { %v1405_v32 = vadd.f32 %v2022_v47, %v1404_v21  ;;  %v1491_v25 = vpack.c.bf16 %v2034_v0, %v2030_v41  ;;  %v2038_v22 = vpop.eup %2037  ;;  %2057 = vpow2.f32 %v1331_v10  ;;  %v3113_v3 = vsub.f32 %v3040_v8, %v2508_v52 }
 0x320   : > { %v1337_v30 = vmul.f32 1.442695, %v3112_v12  ;;  %v1369_v37 = vadd.f32 %v2024_v49, %v1368_v1  ;;  %v2040_v28 = vpop.eup %2039  ;;  %2059 = vpow2.f32 %v1333_v63  ;;  %v3115_v26 = vsub.f32 %v3114_v34, %v2504_v43 }
 0x321   : > { %v1339_v60 = vmul.f32 1.442695, %v3113_v3  ;;  %v1406_v50 = vadd.f32 %v2026_v51, %v1405_v32  ;;  %v2042_v2 = vpop.eup %2041  ;;  %2061 = vpow2.f32 %v1335_v56  ;;  %v3117_v39 = vsub.f32 %v3116_v5, %v2508_v52  ;;  %1522 = vmatprep.subr.bf16.mxu1 %v1491_v25 }
 0x322   : > { %v1341_v15 = vmul.f32 1.442695, %v3115_v26  ;;  %v1370_v42 = vadd.f32 %v2834_v59, %v1369_v37  ;;  %v1492_v8 = vpack.c.bf16 %v2040_v28, %v2036_v20  ;;  %v2044_v45 = vpop.eup %2043  ;;  %2063 = vpow2.f32 %v1337_v30  ;;  %1523 = vmatpush1.bf16.msra.mxu1 %v1490_v19  ;;  %v3120_v37 = vld [vmem:[#allocation36_spill] sm:$0xff] }
 0x323   : > { %v1343_v44 = vmul.f32 1.442695, %v3117_v39  ;;  %v3118_v16 = vsub.f32 %v3043_v58, %v2504_v43  ;;  %v1407_v47 = vadd.f32 %v2030_v41, %v1406_v50  ;;  %v1493_v48 = vpack.c.bf16 %v2042_v2, %v2038_v22  ;;  %v2046_v4 = vpop.eup %2045 }
 0x324   : > { %2065 = vpow2.f32 %v1339_v60  ;;  %v3119_v31 = vsub.f32 %v2483_v23, %v2508_v52  ;;  %v1371_v49 = vadd.f32 %v2032_v17, %v1370_v42  ;;  %v2048_v38 = vpop.eup %2047  ;;  %v3123_v42 = vld [vmem:[#allocation8_spill] sm:$0xff] }
 0x325   : > { %v1345_v29 = vmul.f32 1.442695, %v3118_v16  ;;  %2067 = vpow2.f32 %v1341_v15  ;;  %v1408_v46 = vadd.f32 %v2034_v0, %v1407_v47  ;;  %v2050_v9 = vpop.eup %2049  ;;  %v1494_v51 = vpack.c.bf16 %v2048_v38, %v2044_v45  ;;  %1524 = vmatprep.subr.bf16.mxu1 %v1493_v48 }
 0x326   : > { %v1347_v55 = vmul.f32 1.442695, %v3119_v31  ;;  %2069 = vpow2.f32 %v1343_v44  ;;  %v1372_v33 = vadd.f32 %v2036_v20, %v1371_v49  ;;  %v2052_v43 = vpop.eup %2051  ;;  %v1495_v57 = vpack.c.bf16 %v2050_v9, %v2046_v4  ;;  %1525 = vmatpush1.bf16.msra.mxu1 %v1492_v8  ;;  %v3124_v8 = vld [vmem:[#allocation7_spill] sm:$0xff] }
 0x327   : > { %2071 = vpow2.f32 %v1345_v29  ;;  %v1409_v58 = vadd.f32 %v2038_v22, %v1408_v46  ;;  %v2054_v7 = vpop.eup %2053  ;;  %v3126_v46 = vld [vmem:[#allocation35_spill] sm:$0xff] }
 0x328   : > { %2073 = vpow2.f32 %v1347_v55  ;;  %v1373_v62 = vadd.f32 %v2040_v28, %v1372_v33  ;;  %v2056_v23 = vpop.eup %2055  ;;  %1526 = vmatprep.subr.bf16.mxu1 %v1495_v57  ;;  %v3121_v28 = vld [vmem:[#allocation39_spill] sm:$0xff] }
 0x329   : > { %v1410_v52 = vadd.f32 %v2042_v2, %v1409_v58  ;;  %v2058_v24 = vpop.eup %2057  ;;  %v1496_v59 = vpack.c.bf16 %v2056_v23, %v2052_v43  ;;  %v3122_v34 = vsub.f32 %v3120_v37, %v3121_v28 }
 0x32a   : > { %v1374_v11 = vadd.f32 %v2044_v45, %v1373_v62  ;;  %v2060_v54 = vpop.eup %2059  ;;  %v1497_v6 = vpack.c.bf16 %v2058_v24, %v2054_v7  ;;  %1527 = vmatpush1.bf16.msra.mxu1 %v1494_v51  ;;  %v3125_v45 = vpack.c.bf16 %v3123_v42, %v3124_v8 }
 0x32b   : > { %v1411_v53 = vadd.f32 %v2046_v4, %v1410_v52  ;;  %v2062_v14 = vpop.eup %2061  ;;  %v1144_v26 = vmul.f32 1.442695, %v3122_v34 }
 0x32c   : > { %v1375_v36 = vadd.f32 %v2048_v38, %v1374_v11  ;;  %v2064_v41 = vpop.eup %2063  ;;  %1528 = vmatprep.subr.bf16.mxu1 %v1497_v6  ;;  %v1349_v38 = vld [vmem:[#allocation4] sm:$0x3] }
 0x32d   : > { %v1412_v13 = vadd.f32 %v2050_v9, %v1411_v53  ;;  %v1498_v61 = vpack.c.bf16 %v2064_v41, %v2060_v54  ;;  %2075 = vpow2.f32 %v1144_v26 }
 0x32e   : > { %v2066_v35 = vpop.eup %2065  ;;  %v1376_v10 = vadd.f32 %v2052_v43, %v1375_v36  ;;  %1529 = vmatpush1.bf16.msra.mxu1 %v1496_v59  ;;  %v1579_v36 = vstv %s1559_s17 }
 0x32f   : > { %v2068_v17 = vpop.eup %2067  ;;  %v1413_v40 = vadd.f32 %v2054_v7, %v1412_v13  ;;  %v1499_v63 = vpack.c.bf16 %v2066_v35, %v2062_v14  ;;  %v3128_v7 = vld [vmem:[#allocation37_spill] sm:$0xff] }
 0x330   : > { %v2070_v21 = vpop.eup %2069  ;;  %v1377_v0 = vadd.f32 %v2056_v23, %v1376_v10  ;;  %v3129_v23 = vld [vmem:[#allocation38_spill] sm:$0xff] }
 0x331   : > { %v2072_v27 = vpop.eup %2071  ;;  %v1414_v18 = vadd.f32 %v2058_v24, %v1413_v40  ;;  %1530 = vmatprep.subr.bf16.mxu1 %v1499_v63  ;;  %v1584_v40 = vld [vmem:[%s2190_s21] sm:$0xff] }
 0x332   : > { %v2074_v56 = vpop.eup %2073  ;;  %v1378_v1 = vadd.f32 %v2060_v54, %v1377_v0  ;;  %v1500_v19 = vpack.c.bf16 %v2072_v27, %v2068_v17  ;;  %1531 = vmatpush1.bf16.msra.mxu1 %v1498_v61 }
 0x333   : > { %v1415_v20 = vadd.f32 %v2062_v14, %v1414_v18  ;;  %v1501_v12 = vpack.c.bf16 %v2074_v56, %v2070_v21 }
 0x334   : > { %v1379_v30 = vadd.f32 %v2064_v41, %v1378_v1  ;;  %v1586_v1 = vld [vmem:[%s2190_s21 + $0x10] sm:$0xff] }
 0x335   : > { %v1416_v32 = vadd.f32 %v2066_v35, %v1415_v20  ;;  %1532 = vmatprep.subr.bf16.mxu1 %v1501_v12 }
 0x336   : > { %v1380_v25 = vadd.f32 %v2068_v17, %v1379_v30  ;;  %1533 = vmatpush1.bf16.msra.mxu1 %v1500_v19  ;;  %v1587_v30 = vld [vmem:[%s2190_s21 + $0x18] sm:$0xff] }
 0x337   : > { %v1417_v22 = vadd.f32 %v2070_v21, %v1416_v32  ;;  %v2076_v49 = vpop.eup %2075 }
 0x338   : > { %v1381_v3 = vadd.f32 %v2072_v27, %v1380_v25  ;;  %v1350_v33 = vmul.f32 %v2076_v49, %v1349_v38  ;;  %v1457_v62 = vrot.slane %v2076_v49, %v3128_v7  ;;  %v1461_v52 = vrot.slane %v2076_v49, %v3129_v23  ;;  %v1585_v27 = vld [vmem:[%s2190_s21 + $0x8] sm:$0xff]  ;;  %s441_s21 = scalar_lea.vmem %s2918_s7, %s2888_s18 }
 0x339   : > { %v1418_v60 = vadd.f32 %v2074_v56, %v1417_v22  ;;  %1535 = vmatmul.mubr.bf16.vlgmr.msra.gmra.mrb[12].mxu1 %v3125_v45 }
 0x33a   : > { %v1382_v15 = vrot.slane %v1381_v3, 4  ;;  %v1464_v11 = vmul.f32 0.0, %v1457_v62  ;;  %v1465_v54 = vmul.f32 0.0, %v1461_v52 }
 0x33b   : > { %v1419_v50 = vrot.slane %v1418_v60, 4 }
 0x33c   : > { %v1383_v2 = vadd.f32 %v1382_v15, %v1381_v3 }
 0x33d   : > { %v1420_v5 = vadd.f32 %v1419_v50, %v1418_v60 }
 0x33e   : > { %v1384_v39 = vrot.slane %v1383_v2, 2 }
 0x33f   : > { %v1421_v44 = vrot.slane %v1420_v5, 2 }
 0x340   : > { %v1385_v16 = vadd.f32 %v1384_v39, %v1383_v2 }
 0x341   : > { %v1422_v29 = vadd.f32 %v1421_v44, %v1420_v5 }
 0x342   : > { %v1386_v47 = vrot.slane %v1385_v16, 1 }
 0x343   : > { %v1423_v48 = vrot.slane %v1422_v29, 1 }
 0x344   : > { %v1387_v4 = vadd.f32 %v1386_v47, %v1385_v16 }
 0x345   : > { %v1424_v31 = vadd.f32 %v1423_v48, %v1422_v29 }
 0x347   : > { %v1427_v55 = vcombine.low %v1387_v4, %v1424_v31 }
 0x349   : > { %v1434_v9 = vrot.slane %v1427_v55, %v3126_v46 }
 0x34b   : > { %v1441_v51 = vrot.slane %v1434_v9, %v3126_v46 }
 0x34d   : > { %v1443_v43 = vadd.f32 %v1441_v51, %v1350_v33 }
 0x34f   : > { %1448 = vst.msk [vmem:[#allocation4] sm:$0x3] %vm2301_vm2, %v1443_v43 }
 0x356   : > { %v1557_v57 = vld [vmem:[#allocation4] sm:$0x3] }
 0x357   : > { %2077 = vrcp.f32 %v1557_v57 }
 0x361   : > { %v2078_v24 = vpop.eup %2077 }
 0x362   : > { %v1568_v6 = vrot.slane %v2078_v24, %v3128_v7  ;;  %v1572_v13 = vrot.slane %v2078_v24, %v3129_v23 }
 0x40c   : > { %v1536_v59 = vpop.f32.mrb[12].mxu1 }
 0x40d   : > { %v1545_v53 = vadd.f32 %v1536_v59, %v1464_v11  ;;  %v1538_v14 = vpop.f32.mrb[13].mxu1 }
 0x40e   : > { %v1546_v41 = vadd.f32 %v1538_v14, %v1465_v54  ;;  %v1540_v35 = vpop.f32.mrb[14].mxu1 }
 0x40f   : > { %v1575_v10 = vmul.f32 %v1568_v6, %v1545_v53  ;;  %v1547_v61 = vadd.f32 %v1540_v35, %v1464_v11  ;;  %v1542_v17 = vpop.f32.mrb[15].mxu1 }
 0x410   : > { %v1576_v63 = vmul.f32 %v1572_v13, %v1546_v41  ;;  %v1548_v21 = vadd.f32 %v1542_v17, %v1465_v54 }
 0x411   : > { %v1580_v0 = vmul.f32 %v1579_v36, %v1575_v10  ;;  %v1577_v18 = vmul.f32 %v1568_v6, %v1547_v61 }
 0x412   : > { %v1581_v56 = vmul.f32 %v1579_v36, %v1576_v63  ;;  %v1578_v19 = vmul.f32 %v1572_v13, %v1548_v21 }
 0x413   : > { %v1588_v20 = vadd.f32 %v1584_v40, %v1580_v0  ;;  %v1582_v12 = vmul.f32 %v1579_v36, %v1577_v18 }
 0x414   : > { %v1589_v32 = vadd.f32 %v1585_v27, %v1581_v56  ;;  %v1583_v25 = vmul.f32 %v1579_v36, %v1578_v19 }
 0x415   : > { %v1590_v22 = vadd.f32 %v1586_v1, %v1582_v12  ;;  %vm1592_vm3 = vcmp.ge.f32.partialorder %v1588_v20, 0.0  ;;  %v1596_v3 = vmul.f32 0.05, %v1588_v20 }
 0x416   : > { %v1591_v60 = vadd.f32 %v1587_v30, %v1583_v25  ;;  %vm1593_vm4 = vcmp.ge.f32.partialorder %v1589_v32, 0.0  ;;  %v1597_v37 = vmul.f32 0.05, %v1589_v32 }
 0x417   : > { %v1600_v28 = vsel %vm1592_vm3, %v1588_v20, %v1596_v3  ;;  %vm1594_vm5 = vcmp.ge.f32.partialorder %v1590_v22, 0.0  ;;  %v1598_v34 = vmul.f32 0.05, %v1590_v22 }
 0x418   : > { %v1601_v26 = vsel %vm1593_vm4, %v1589_v32, %v1597_v37  ;;  %vm1595_vm6 = vcmp.ge.f32.partialorder %v1591_v60, 0.0  ;;  %v1599_v15 = vmul.f32 0.05, %v1591_v60  ;;  %v1613_v50 = vmul.f32 %v1600_v28, %v1600_v28 }
 0x419   : > { %v1604_v2 = vadd.f32 %v1601_v26, %v1600_v28  ;;  %v1914_v5 = vpack.c.bf16 %v1601_v26, %v1600_v28  ;;  %v1602_v39 = vsel %vm1594_vm5, %v1590_v22, %v1598_v34  ;;  %v1614_v44 = vmul.f32 %v1601_v26, %v1601_v26 }
 0x41a   : > { %v1603_v42 = vsel %vm1595_vm6, %v1591_v60, %v1599_v15  ;;  %v1615_v8 = vmul.f32 %v1602_v39, %v1602_v39 }
 0x41b   : > { %1605 = vadd.xlane.f32.xlu0 %v1604_v2  ;;  %v1607_v45 = vadd.f32 %v1603_v42, %v1602_v39  ;;  %v1915_v16 = vpack.c.bf16 %v1603_v42, %v1602_v39  ;;  %v1617_v29 = vadd.f32 %v1614_v44, %v1613_v50  ;;  %v1616_v47 = vmul.f32 %v1603_v42, %v1603_v42 }
 0x41c   : > { %1637 = vst [vmem:[%s441_s21] sm:$0xff] %v1914_v5 }
 0x41d   : > { %v1620_v48 = vadd.f32 %v1616_v47, %v1615_v8  ;;  %1638 = vst [vmem:[%s441_s21 + $0x8] sm:$0xff] %v1915_v16 }
 0x41f   : > { %1608 = vadd.xlane.f32.xlu0 %v1607_v45 }
 0x423   : > { %1618 = vadd.xlane.f32.xlu0 %v1617_v29 }
 0x427   : > { %1621 = vadd.xlane.f32.xlu0 %v1620_v48 }
 0x4a8   : > { %v1606_v4 = vpop.xlane.xlu0 %1605 }
 0x4a9   : > { %1611 = vst.msk [vmem:[%s451_s23] sm:$0xff] %vm1610_vm7, %v1606_v4 }
 0x4ac   : > { %v1609_v31 = vpop.xlane.xlu0 %1608 }
 0x4ad   : > { %1612 = vst.msk [vmem:[%s451_s23 + $0x8] sm:$0xff] %vm1610_vm7, %v1609_v31 }
 0x4b0   : > { %v1619_v55 = vpop.xlane.xlu0 %1618 }
 0x4b1   : > { %1623 = vst.msk [vmem:[%s460_s26] sm:$0xff] %vm1610_vm7, %v1619_v55 }
 0x4b4   : > { %v1622_v49 = vpop.xlane.xlu0 %1621 }
 0x4b5   : > { %1624 = vst.msk [vmem:[%s460_s26 + $0x8] sm:$0xff] %vm1610_vm7, %v1622_v49 }
 0x4b6 PF: > { %s21_s13 = sadd.s32 1, %s2101_s13   ;;  %s3130_s11 = smov %s2097_s12 }
 0x4b7   : > { %p18_p5 = scmp.ge.s32.totalorder %s21_s13, 4   ;;  %s3131_s12 = smov %s3133_s6 }
 0x4b9   :  { %20 = sbr.rel (!%p18_p5) target bundleno = 2 (0x2), region = 113 }

</bundles_post_ra>
